<compile_context>
chip_gen: v7x
topology: tpu7x:2x2x1
jax: 0.10.0
libtpu: 0.0.40
codegen_flags: <defaults>
</compile_context>

<pallas_src>
import functools

import jax
import jax.numpy as jnp
from jax.experimental import pallas as pl
from jax.experimental.pallas import tpu as pltpu

LANES = 128          # lane width of padded channel / hidden / class dims
CIN2 = 16            # conv2 input channels carried through im2col (10 real + 6 pad)
NEG_BIAS = -1e9      # bias of padded logit columns -> excluded from log_softmax


# ------------------------------ Pallas kernels ------------------------------ #

def _conv_pool_relu_kernel(p_ref, w_ref, b_ref, o_ref):
    """Fused conv-as-matmul + bias + 2x2 max-pool + relu.

    p_ref: (4, tm, K) bf16 pooled im2col patches (leading axis = pool offset)
    w_ref: (K, 128) bf16    b_ref: (1, 128) f32    o_ref: (tm, 128) bf16

    One long (4*tm, K) x (K, 128) MXU push, then a VPU max over the 4 pooling
    offsets (bias/relu after the max is equivalent since the bias is constant
    over the window).  A single push keeps the systolic array fed and avoids
    four MRF drain bubbles on v5e/v6e.
    """
    q, tm, k = p_ref.shape
    acc = jnp.dot(p_ref[...].reshape(q * tm, k), w_ref[...],
                  preferred_element_type=jnp.float32)
    acc = acc.reshape(q, tm, o_ref.shape[-1])
    pooled = acc[0]
    for s in range(1, q):
        pooled = jnp.maximum(pooled, acc[s])
    o_ref[...] = jnp.maximum(pooled + b_ref[...], 0.0).astype(o_ref.dtype)


def _fc_head_kernel(x_ref, w1_ref, b1_ref, w2_ref, b2_ref, o_ref):
    """Fused fc1 + relu + (dropout = identity in eval) + fc2 + log_softmax."""
    h = jnp.dot(x_ref[...], w1_ref[...], preferred_element_type=jnp.float32)
    h = jnp.maximum(h + b1_ref[...], 0.0)                     # (tb, 128) f32
    logits = jnp.dot(h.astype(jnp.bfloat16), w2_ref[...],
                     preferred_element_type=jnp.float32) + b2_ref[...]
    # Padded class columns carry a -1e9 bias -> exp underflows to exactly 0.
    m = jnp.max(logits, axis=-1, keepdims=True)
    z = logits - m
    lse = jnp.log(jnp.sum(jnp.exp(z), axis=-1, keepdims=True))
    o_ref[...] = z - lse


# ------------------------------ tile sizing --------------------------------- #

@functools.lru_cache(maxsize=None)
def _vmem_limit_bytes():
    """Generation-aware scoped-VMEM budget: ~64 MiB on 128 MiB parts (v5e/v6e),
    ~32 MiB on v7x (64 MiB/TC)."""
    try:
        cap = int(pltpu.get_tpu_info().vmem_capacity_bytes)
    except Exception:
        cap = 64 * 1024 * 1024
    return max(16 * 1024 * 1024, min(cap // 2, 64 * 1024 * 1024))


def _round_up(x, m):
    return (x + m - 1) // m * m


def _conv_tile_rows(m, kpad, vmem_limit):
    """Pooled-row tile: as large as the VMEM budget allows (multiple of 16)."""
    # bytes/row in flight: double-buffered bf16 patch + output blocks, the
    # loaded patch value, and the (4-offsets-wide) f32 accumulator.
    per_row = 2 * (4 * kpad + LANES) * 2 + 4 * kpad * 2 + 4 * LANES * 4
    hard_cap = 4096 if vmem_limit >= 48 * 1024 * 1024 else 2048
    cap = max(128, min(hard_cap, (vmem_limit // 2) // per_row))
    if m <= cap:
        return _round_up(m, 16)
    nblk = pl.cdiv(m, cap)
    return _round_up(pl.cdiv(m, nblk), 16)


def _fc_tile_rows(b, k, vmem_limit):
    per_row = 2 * k * 2 + 4 * LANES * 4
    cap = max(64, min(512, (vmem_limit // 4) // per_row))
    if b <= cap:
        return _round_up(b, 16)
    nblk = pl.cdiv(b, cap)
    return _round_up(pl.cdiv(b, nblk), 16)


# ----------------------------- kernel wrappers ------------------------------- #

def conv_pool_relu(patches, w, b):
    """patches (4, M, K) bf16, w (Kpad, 128) bf16, b (1, 128) f32
    -> (M, 128) bf16 pooled + relu'd conv output (row-tiled, pipelined)."""
    vmem_limit = _vmem_limit_bytes()
    _, m, k = patches.shape
    kpad, n = w.shape
    tm = _conv_tile_rows(m, kpad, vmem_limit)
    mpad = pl.cdiv(m, tm) * tm
    if kpad != k or mpad != m:          # zero rows/cols: numerically free
        patches = jnp.pad(patches, ((0, 0), (0, mpad - m), (0, kpad - k)))

    out = pl.pallas_call(
        _conv_pool_relu_kernel,
        grid=(mpad // tm,),
        in_specs=[
            pl.BlockSpec((4, tm, kpad), lambda i: (0, i, 0)),
            pl.BlockSpec((kpad, n), lambda i: (0, 0)),
            pl.BlockSpec((1, n), lambda i: (0, 0)),
        ],
        out_specs=pl.BlockSpec((tm, n), lambda i: (i, 0)),
        out_shape=jax.ShapeDtypeStruct((mpad, n), jnp.bfloat16),
        compiler_params=pltpu.CompilerParams(
            dimension_semantics=("parallel",),
            vmem_limit_bytes=vmem_limit),
    )(patches, w, b)
    return out if mpad == m else out[:m]


def fc_head(x, w1, b1, w2, b2):
    """x (B, 2048) bf16 -> (B, 128) f32 log-probabilities (first 10 valid)."""
    vmem_limit = _vmem_limit_bytes()
    bsz, k = x.shape
    n = w2.shape[1]
    tb = _fc_tile_rows(bsz, k, vmem_limit)
    bpad = pl.cdiv(bsz, tb) * tb
    if bpad != bsz:
        x = jnp.pad(x, ((0, bpad - bsz), (0, 0)))

    out = pl.pallas_call(
        _fc_head_kernel,
        grid=(bpad // tb,),
        in_specs=[
            pl.BlockSpec((tb, k), lambda i: (i, 0)),
            pl.BlockSpec((k, n), lambda i: (0, 0)),
            pl.BlockSpec((1, n), lambda i: (0, 0)),
            pl.BlockSpec((n, n), lambda i: (0, 0)),
            pl.BlockSpec((1, n), lambda i: (0, 0)),
        ],
        out_specs=pl.BlockSpec((tb, n), lambda i: (i, 0)),
        out_shape=jax.ShapeDtypeStruct((bpad, n), jnp.float32),
        compiler_params=pltpu.CompilerParams(
            dimension_semantics=("parallel",),
            vmem_limit_bytes=vmem_limit),
    )(x, w1, b1, w2, b2)
    return out if bpad == bsz else out[:bsz]


# ------------------------------- JAX glue ------------------------------------ #

def im2col_pooled(x, kh, kw):
    """NHWC x -> (4, B*Ho*Wo, C*kh*kw) pooled im2col patches.

    The leading axis enumerates the 2x2 max-pool window offset; K is ordered
    (cin, kh, kw) to match PyTorch's conv weight .reshape(Cout, -1).  Built
    from stride-2 slices + a single trailing-axis stack so XLA emits strided
    copies rather than materialising / permuting a (kh*kw, B, OH, OW, C) blob.
    """
    B, H, W, C = x.shape
    Ho, Wo = (H - kh + 1) // 2, (W - kw + 1) // 2
    groups = []
    for dy in range(2):
        for dx in range(2):
            cols = [x[:, dy + i:dy + i + 2 * Ho:2, dx + j:dx + j + 2 * Wo:2, :]
                    for i in range(kh) for j in range(kw)]
            p = jnp.stack(cols, axis=-1)              # (B, Ho, Wo, C, kh*kw)
            groups.append(p.reshape(B * Ho * Wo, C * kh * kw))
    return jnp.stack(groups, axis=0)                  # (4, M, K)


def init_params(key):
    """Raw parameters in PyTorch layout."""
    ks = jax.random.split(key, 8)

    def u(k, shape, fan_in):
        bound = 1.0 / jnp.sqrt(jnp.float32(fan_in))
        return jax.random.uniform(k, shape, jnp.float32, -bound, bound)

    return {
        "w1": u(ks[0], (10, 1, 5, 5), 1 * 5 * 5),
        "b1": u(ks[1], (10,), 1 * 5 * 5),
        "w2": u(ks[2], (20, 10, 5, 5), 10 * 5 * 5),
        "b2": u(ks[3], (20,), 10 * 5 * 5),
        "fc1_w": u(ks[4], (50, 320), 320),
        "fc1_b": u(ks[5], (50,), 320),
        "fc2_w": u(ks[6], (10, 50), 50),
        "fc2_b": u(ks[7], (10,), 50),
    }


def prepare_params(raw):
    """One-time weight re-layout: fold every transpose / flatten-order permute /
    zero-pad into the parameters so the forward pass is pure kernel calls."""
    def pad2d(a, rows, cols):
        return jnp.pad(a, ((0, rows - a.shape[0]), (0, cols - a.shape[1])))

    # conv1: (10,1,5,5) -> (K 25->32, N 10->128), feature order (cin, kh, kw).
    w1 = raw["w1"].reshape(10, 25).T                              # (25, 10)
    w1 = pad2d(w1, 32, LANES).astype(jnp.bfloat16)
    b1 = jnp.zeros((1, LANES), jnp.float32).at[0, :10].set(raw["b1"])

    # conv2: activation arrives with only CIN2=16 (lane-sliced) input channels,
    # so pad Cin 10->16 before flattening; (20,10,5,5) -> (K 400->512, N 20->128).
    w2 = jnp.zeros((20, CIN2, 5, 5), raw["w2"].dtype).at[:, :10].set(raw["w2"])
    w2 = w2.reshape(20, CIN2 * 25).T                              # (400, 20)
    w2 = pad2d(w2, 512, LANES).astype(jnp.bfloat16)
    b2 = jnp.zeros((1, LANES), jnp.float32).at[0, :20].set(raw["b2"])

    # fc1: PyTorch's view(-1, 320) flattens (c, h, w); activations arrive
    # flattened as (h, w, lane) with 128 lane-padded channels -> permute and
    # scatter the 320 input columns into (4*4*128, 50->128).
    f1 = raw["fc1_w"].reshape(50, 20, 4, 4)                       # (o, c, h, w)
    f1 = jnp.transpose(f1, (0, 2, 3, 1))                          # (o, h, w, c)
    f1 = jnp.pad(f1, ((0, 0), (0, 0), (0, 0), (0, LANES - 20)))   # (o, h, w, 128)
    f1 = f1.reshape(50, 16 * LANES).T                             # (2048, 50)
    f1 = pad2d(f1, 16 * LANES, LANES).astype(jnp.bfloat16)
    fb1 = jnp.zeros((1, LANES), jnp.float32).at[0, :50].set(raw["fc1_b"])

    # fc2: (10,50) -> (K 50->128, N 10->128); padded class columns stay exactly
    # zero and get a large negative bias so the fused log_softmax ignores them.
    f2 = pad2d(raw["fc2_w"].T, LANES, LANES).astype(jnp.bfloat16)  # (128, 128)
    fb2 = jnp.full((1, LANES), NEG_BIAS, jnp.float32).at[0, :10].set(raw["fc2_b"])

    return {"w1": w1, "b1": b1, "w2": w2, "b2": b2,
            "fc1_w": f1, "fc1_b": fb1, "fc2_w": f2, "fc2_b": fb2}


def mnist_net_forward(params, x_nchw):
    x = jnp.transpose(x_nchw, (0, 2, 3, 1)).astype(jnp.bfloat16)  # NCHW -> NHWC
    B = x.shape[0]

    # conv1 (5x5, 1->10) + max_pool2d(2) + relu, fused; output lane-dense.
    p1 = im2col_pooled(x, 5, 5)                           # (4, B*144, 25) bf16
    h1 = conv_pool_relu(p1, params["w1"], params["b1"])   # (B*144, 128) bf16

    # conv2 (5x5, ->20) + Dropout2d(identity) + max_pool2d(2) + relu, fused.
    # Only the 16 leading channels of h1 (10 real + 6 exactly-zero pad) feed
    # conv2's reduction, so the im2col / patch traffic stays small.
    # TODO(synk): Dropout2d / F.dropout are identity here (inference mode);
    # PyTorch training-mode RNG is not reproduced.
    h1 = h1.reshape(B, 12, 12, LANES)[..., :CIN2]         # (B, 12, 12, 16)
    p2 = im2col_pooled(h1, 5, 5)                          # (4, B*16, 400) bf16
    h2 = conv_pool_relu(p2, params["w2"], params["b2"])   # (B*16, 128) bf16

    # Flatten in (h, w, lane) order (row-major no-op reshape); fc1 weights were
    # pre-permuted from PyTorch's (c, h, w) order and pre-scattered to match.
    feats = h2.reshape(B, 16 * LANES)                     # (B, 2048) bf16

    logp = fc_head(feats, params["fc1_w"], params["fc1_b"],
                   params["fc2_w"], params["fc2_b"])      # (B, 128) f32
    return logp[:, :10]                                   # (B, 10) log_softmax


def mnist_net_reference(raw, x_nchw):
    """Pure-JAX f32 reference of the PyTorch module (eval mode)."""
    x = x_nchw.astype(jnp.float32)

    def conv(v, w, b):
        y = jax.lax.conv_general_dilated(
            v, w, window_strides=(1, 1), padding="VALID",
            dimension_numbers=("NCHW", "OIHW", "NCHW"))
        return y + b[None, :, None, None]

    def pool2(v):
        return jax.lax.reduce_window(v, -jnp.inf, jax.lax.max,
                                     (1, 1, 2, 2), (1, 1, 2, 2), "VALID")

    h = jax.nn.relu(pool2(conv(x, raw["w1"], raw["b1"])))
    h = jax.nn.relu(pool2(conv(h, raw["w2"], raw["b2"])))
    h = h.reshape(h.shape[0], -1)                          # (c, h, w) flatten
    h = jax.nn.relu(h @ raw["fc1_w"].T + raw["fc1_b"])
    logits = h @ raw["fc2_w"].T + raw["fc2_b"]
    return jax.nn.log_softmax(logits, axis=-1)


if __name__ == "__main__":
    key = jax.random.PRNGKey(0)
    pkey, xkey = jax.random.split(key)
    raw = init_params(pkey)
    params = prepare_params(raw)

    # The -1e9 masking of padded logit columns requires the padded fc2 weight
    # columns to be exactly zero.
    assert bool(jnp.all(params["fc2_w"][:, 10:] == 0))

    # Batch of 2 MNIST-sized NCHW images (28x28 is required by fc1's 320=20*4*4).
    x = jax.random.normal(xkey, (2, 1, 28, 28), dtype=jnp.float32)

    out = jax.jit(mnist_net_forward)(params, x)
    out = jax.block_until_ready(out)

    assert out.shape == (2, 10)
    assert bool(jnp.all(jnp.isfinite(out)))
    # log_softmax rows should exponentiate-sum to 1.
    assert bool(jnp.allclose(jnp.sum(jnp.exp(out), axis=1), 1.0, atol=1e-4))
    # Tolerance check against a pure-JAX f32 reference (activations are bf16).
    ref = jax.jit(mnist_net_reference)(raw, x)
    assert bool(jnp.max(jnp.abs(out - ref)) < 0.15)
    print("KERNEL_OK")
</pallas_src>

<mosaic_0001>
module attributes {stable_mosaic.version = 11 : i64} {
  func.func @_conv_pool_relu_kernel(%arg0: i32, %arg1: memref<4x288x32xbf16, #tpu.memory_space<vmem>>, %arg2: memref<32x128xbf16, #tpu.memory_space<vmem>>, %arg3: memref<1x128xf32, #tpu.memory_space<vmem>>, %arg4: memref<288x128xbf16, #tpu.memory_space<vmem>>) attributes {dimension_semantics = [#tpu.dimension_semantics<parallel>], iteration_bounds = array<i64: 1>, scalar_prefetch = 0 : i64, scratch_operands = 0 : i64, tpu.core_type = #tpu.core_type<tc>, window_params = [{transform_indices = @transform_0, window_bounds = array<i64: 4, 288, 32>}, {pipeline_mode = #tpu.pipeline_mode<synchronous>, transform_indices = @transform_1, window_bounds = array<i64: 32, 128>}, {pipeline_mode = #tpu.pipeline_mode<synchronous>, transform_indices = @transform_2, window_bounds = array<i64: 1, 128>}, {transform_indices = @transform_3, window_bounds = array<i64: 288, 128>}]} {
    %c0 = arith.constant 0 : index
    %c0_0 = arith.constant 0 : index
    %c0_1 = arith.constant 0 : index
    %0 = vector.load %arg1[%c0, %c0_0, %c0_1] : memref<4x288x32xbf16, #tpu.memory_space<vmem>>, vector<4x288x32xbf16>
    %1 = vector.shape_cast %0 : vector<4x288x32xbf16> to vector<1152x32xbf16>
    %c0_2 = arith.constant 0 : index
    %c0_3 = arith.constant 0 : index
    %2 = vector.load %arg2[%c0_2, %c0_3] : memref<32x128xbf16, #tpu.memory_space<vmem>>, vector<32x128xbf16>
    %cst = arith.constant dense<0.000000e+00> : vector<1152x128xf32>
    %3 = tpu.matmul %1, %2, %cst {dimension_numbers = #tpu.dot_dimension_numbers<[1], [0], [0], [1], [0, 0, 1, 1], [], []>} : vector<1152x32xbf16>, vector<32x128xbf16>, vector<1152x128xf32> -> vector<1152x128xf32>
    %4 = vector.shape_cast %3 : vector<1152x128xf32> to vector<4x288x128xf32>
    %5 = vector.extract_strided_slice %4 {offsets = [0, 0, 0], sizes = [1, 288, 128], strides = [1, 1, 1]} : vector<4x288x128xf32> to vector<1x288x128xf32>
    %6 = vector.shape_cast %5 : vector<1x288x128xf32> to vector<288x128xf32>
    %7 = vector.extract_strided_slice %4 {offsets = [1, 0, 0], sizes = [1, 288, 128], strides = [1, 1, 1]} : vector<4x288x128xf32> to vector<1x288x128xf32>
    %8 = vector.shape_cast %7 : vector<1x288x128xf32> to vector<288x128xf32>
    %9 = arith.maximumf %6, %8 : vector<288x128xf32>
    %10 = vector.extract_strided_slice %4 {offsets = [2, 0, 0], sizes = [1, 288, 128], strides = [1, 1, 1]} : vector<4x288x128xf32> to vector<1x288x128xf32>
    %11 = vector.shape_cast %10 : vector<1x288x128xf32> to vector<288x128xf32>
    %12 = arith.maximumf %9, %11 : vector<288x128xf32>
    %13 = vector.extract_strided_slice %4 {offsets = [3, 0, 0], sizes = [1, 288, 128], strides = [1, 1, 1]} : vector<4x288x128xf32> to vector<1x288x128xf32>
    %14 = vector.shape_cast %13 : vector<1x288x128xf32> to vector<288x128xf32>
    %15 = arith.maximumf %12, %14 : vector<288x128xf32>
    %c0_4 = arith.constant 0 : index
    %c0_5 = arith.constant 0 : index
    %16 = vector.load %arg3[%c0_4, %c0_5] : memref<1x128xf32, #tpu.memory_space<vmem>>, vector<1x128xf32>
    %17 = vector.broadcast %16 : vector<1x128xf32> to vector<288x128xf32>
    %18 = arith.addf %15, %17 : vector<288x128xf32>
    %cst_6 = arith.constant 0.000000e+00 : f32
    %19 = vector.broadcast %cst_6 : f32 to vector<288x128xf32>
    %20 = arith.maximumf %18, %19 : vector<288x128xf32>
    %21 = arith.truncf %20 : vector<288x128xf32> to vector<288x128xbf16>
    %c0_7 = arith.constant 0 : index
    %c0_8 = arith.constant 0 : index
    %22 = vector.load %arg4[%c0_7, %c0_8] : memref<288x128xbf16, #tpu.memory_space<vmem>>, vector<288x128xbf16>
    tpu.vector_store %arg4[%c0_7, %c0_8], %21 {strides = array<i32>} : memref<288x128xbf16, #tpu.memory_space<vmem>>, vector<288x128xbf16>,
    return
  }
  func.func @transform_0(%arg0: i32) -> (i32, i32, i32) {
    %c0_i32 = arith.constant 0 : i32
    %c0_i32_0 = arith.constant 0 : i32
    %c0_i32_1 = arith.constant 0 : i32
    return %c0_i32, %arg0, %c0_i32_0 : i32, i32, i32
  }
  func.func @transform_1(%arg0: i32) -> (i32, i32) {
    %c0_i32 = arith.constant 0 : i32
    %c0_i32_0 = arith.constant 0 : i32
    %c0_i32_1 = arith.constant 0 : i32
    return %c0_i32, %c0_i32_0 : i32, i32
  }
  func.func @transform_2(%arg0: i32) -> (i32, i32) {
    %c0_i32 = arith.constant 0 : i32
    %c0_i32_0 = arith.constant 0 : i32
    %c0_i32_1 = arith.constant 0 : i32
    return %c0_i32, %c0_i32_0 : i32, i32
  }
  func.func @transform_3(%arg0: i32) -> (i32, i32) {
    %c0_i32 = arith.constant 0 : i32
    %c0_i32_0 = arith.constant 0 : i32
    return %arg0, %c0_i32 : i32, i32
  }
}

module attributes {stable_mosaic.version = 11 : i64} {
  func.func @_conv_pool_relu_kernel(%arg0: i32, %arg1: memref<4x32x512xbf16, #tpu.memory_space<vmem>>, %arg2: memref<512x128xbf16, #tpu.memory_space<vmem>>, %arg3: memref<1x128xf32, #tpu.memory_space<vmem>>, %arg4: memref<32x128xbf16, #tpu.memory_space<vmem>>) attributes {dimension_semantics = [#tpu.dimension_semantics<parallel>], iteration_bounds = array<i64: 1>, scalar_prefetch = 0 : i64, scratch_operands = 0 : i64, tpu.core_type = #tpu.core_type<tc>, window_params = [{transform_indices = @transform_0, window_bounds = array<i64: 4, 32, 512>}, {pipeline_mode = #tpu.pipeline_mode<synchronous>, transform_indices = @transform_1, window_bounds = array<i64: 512, 128>}, {pipeline_mode = #tpu.pipeline_mode<synchronous>, transform_indices = @transform_2, window_bounds = array<i64: 1, 128>}, {transform_indices = @transform_3, window_bounds = array<i64: 32, 128>}]} {
    %c0 = arith.constant 0 : index
    %c0_0 = arith.constant 0 : index
    %c0_1 = arith.constant 0 : index
    %0 = vector.load %arg1[%c0, %c0_0, %c0_1] : memref<4x32x512xbf16, #tpu.memory_space<vmem>>, vector<4x32x512xbf16>
    %1 = vector.shape_cast %0 : vector<4x32x512xbf16> to vector<128x512xbf16>
    %c0_2 = arith.constant 0 : index
    %c0_3 = arith.constant 0 : index
    %2 = vector.load %arg2[%c0_2, %c0_3] : memref<512x128xbf16, #tpu.memory_space<vmem>>, vector<512x128xbf16>
    %cst = arith.constant dense<0.000000e+00> : vector<128x128xf32>
    %3 = tpu.matmul %1, %2, %cst {dimension_numbers = #tpu.dot_dimension_numbers<[1], [0], [0], [1], [0, 0, 1, 1], [], []>} : vector<128x512xbf16>, vector<512x128xbf16>, vector<128x128xf32> -> vector<128x128xf32>
    %4 = vector.shape_cast %3 : vector<128x128xf32> to vector<4x32x128xf32>
    %5 = vector.extract_strided_slice %4 {offsets = [0, 0, 0], sizes = [1, 32, 128], strides = [1, 1, 1]} : vector<4x32x128xf32> to vector<1x32x128xf32>
    %6 = vector.shape_cast %5 : vector<1x32x128xf32> to vector<32x128xf32>
    %7 = vector.extract_strided_slice %4 {offsets = [1, 0, 0], sizes = [1, 32, 128], strides = [1, 1, 1]} : vector<4x32x128xf32> to vector<1x32x128xf32>
    %8 = vector.shape_cast %7 : vector<1x32x128xf32> to vector<32x128xf32>
    %9 = arith.maximumf %6, %8 : vector<32x128xf32>
    %10 = vector.extract_strided_slice %4 {offsets = [2, 0, 0], sizes = [1, 32, 128], strides = [1, 1, 1]} : vector<4x32x128xf32> to vector<1x32x128xf32>
    %11 = vector.shape_cast %10 : vector<1x32x128xf32> to vector<32x128xf32>
    %12 = arith.maximumf %9, %11 : vector<32x128xf32>
    %13 = vector.extract_strided_slice %4 {offsets = [3, 0, 0], sizes = [1, 32, 128], strides = [1, 1, 1]} : vector<4x32x128xf32> to vector<1x32x128xf32>
    %14 = vector.shape_cast %13 : vector<1x32x128xf32> to vector<32x128xf32>
    %15 = arith.maximumf %12, %14 : vector<32x128xf32>
    %c0_4 = arith.constant 0 : index
    %c0_5 = arith.constant 0 : index
    %16 = vector.load %arg3[%c0_4, %c0_5] : memref<1x128xf32, #tpu.memory_space<vmem>>, vector<1x128xf32>
    %17 = vector.broadcast %16 : vector<1x128xf32> to vector<32x128xf32>
    %18 = arith.addf %15, %17 : vector<32x128xf32>
    %cst_6 = arith.constant 0.000000e+00 : f32
    %19 = vector.broadcast %cst_6 : f32 to vector<32x128xf32>
    %20 = arith.maximumf %18, %19 : vector<32x128xf32>
    %21 = arith.truncf %20 : vector<32x128xf32> to vector<32x128xbf16>
    %c0_7 = arith.constant 0 : index
    %c0_8 = arith.constant 0 : index
    %22 = vector.load %arg4[%c0_7, %c0_8] : memref<32x128xbf16, #tpu.memory_space<vmem>>, vector<32x128xbf16>
    tpu.vector_store %arg4[%c0_7, %c0_8], %21 {strides = array<i32>} : memref<32x128xbf16, #tpu.memory_space<vmem>>, vector<32x128xbf16>,
    return
  }
  func.func @transform_0(%arg0: i32) -> (i32, i32, i32) {
    %c0_i32 = arith.constant 0 : i32
    %c0_i32_0 = arith.constant 0 : i32
    %c0_i32_1 = arith.constant 0 : i32
    return %c0_i32, %arg0, %c0_i32_0 : i32, i32, i32
  }
  func.func @transform_1(%arg0: i32) -> (i32, i32) {
    %c0_i32 = arith.constant 0 : i32
    %c0_i32_0 = arith.constant 0 : i32
    %c0_i32_1 = arith.constant 0 : i32
    return %c0_i32, %c0_i32_0 : i32, i32
  }
  func.func @transform_2(%arg0: i32) -> (i32, i32) {
    %c0_i32 = arith.constant 0 : i32
    %c0_i32_0 = arith.constant 0 : i32
    %c0_i32_1 = arith.constant 0 : i32
    return %c0_i32, %c0_i32_0 : i32, i32
  }
  func.func @transform_3(%arg0: i32) -> (i32, i32) {
    %c0_i32 = arith.constant 0 : i32
    %c0_i32_0 = arith.constant 0 : i32
    return %arg0, %c0_i32 : i32, i32
  }
}

module attributes {stable_mosaic.version = 11 : i64} {
  func.func @_fc_head_kernel(%arg0: i32, %arg1: memref<16x2048xbf16, #tpu.memory_space<vmem>>, %arg2: memref<2048x128xbf16, #tpu.memory_space<vmem>>, %arg3: memref<1x128xf32, #tpu.memory_space<vmem>>, %arg4: memref<128x128xbf16, #tpu.memory_space<vmem>>, %arg5: memref<1x128xf32, #tpu.memory_space<vmem>>, %arg6: memref<16x128xf32, #tpu.memory_space<vmem>>) attributes {dimension_semantics = [#tpu.dimension_semantics<parallel>], iteration_bounds = array<i64: 1>, scalar_prefetch = 0 : i64, scratch_operands = 0 : i64, tpu.core_type = #tpu.core_type<tc>, window_params = [{transform_indices = @transform_0, window_bounds = array<i64: 16, 2048>}, {pipeline_mode = #tpu.pipeline_mode<synchronous>, transform_indices = @transform_1, window_bounds = array<i64: 2048, 128>}, {pipeline_mode = #tpu.pipeline_mode<synchronous>, transform_indices = @transform_2, window_bounds = array<i64: 1, 128>}, {pipeline_mode = #tpu.pipeline_mode<synchronous>, transform_indices = @transform_3, window_bounds = array<i64: 128, 128>}, {pipeline_mode = #tpu.pipeline_mode<synchronous>, transform_indices = @transform_4, window_bounds = array<i64: 1, 128>}, {transform_indices = @transform_5, window_bounds = array<i64: 16, 128>}]} {
    %c0 = arith.constant 0 : index
    %c0_0 = arith.constant 0 : index
    %0 = vector.load %arg1[%c0, %c0_0] : memref<16x2048xbf16, #tpu.memory_space<vmem>>, vector<16x2048xbf16>
    %c0_1 = arith.constant 0 : index
    %c0_2 = arith.constant 0 : index
    %1 = vector.load %arg2[%c0_1, %c0_2] : memref<2048x128xbf16, #tpu.memory_space<vmem>>, vector<2048x128xbf16>
    %cst = arith.constant dense<0.000000e+00> : vector<16x128xf32>
    %2 = tpu.matmul %0, %1, %cst {dimension_numbers = #tpu.dot_dimension_numbers<[1], [0], [0], [1], [0, 0, 1, 1], [], []>} : vector<16x2048xbf16>, vector<2048x128xbf16>, vector<16x128xf32> -> vector<16x128xf32>
    %c0_3 = arith.constant 0 : index
    %c0_4 = arith.constant 0 : index
    %3 = vector.load %arg3[%c0_3, %c0_4] : memref<1x128xf32, #tpu.memory_space<vmem>>, vector<1x128xf32>
    %4 = vector.broadcast %3 : vector<1x128xf32> to vector<16x128xf32>
    %5 = arith.addf %2, %4 : vector<16x128xf32>
    %cst_5 = arith.constant 0.000000e+00 : f32
    %6 = vector.broadcast %cst_5 : f32 to vector<16x128xf32>
    %7 = arith.maximumf %5, %6 : vector<16x128xf32>
    %8 = arith.truncf %7 : vector<16x128xf32> to vector<16x128xbf16>
    %c0_6 = arith.constant 0 : index
    %c0_7 = arith.constant 0 : index
    %9 = vector.load %arg4[%c0_6, %c0_7] : memref<128x128xbf16, #tpu.memory_space<vmem>>, vector<128x128xbf16>
    %cst_8 = arith.constant dense<0.000000e+00> : vector<16x128xf32>
    %10 = tpu.matmul %8, %9, %cst_8 {dimension_numbers = #tpu.dot_dimension_numbers<[1], [0], [0], [1], [0, 0, 1, 1], [], []>} : vector<16x128xbf16>, vector<128x128xbf16>, vector<16x128xf32> -> vector<16x128xf32>
    %c0_9 = arith.constant 0 : index
    %c0_10 = arith.constant 0 : index
    %11 = vector.load %arg5[%c0_9, %c0_10] : memref<1x128xf32, #tpu.memory_space<vmem>>, vector<1x128xf32>
    %12 = vector.broadcast %11 : vector<1x128xf32> to vector<16x128xf32>
    %13 = arith.addf %10, %12 : vector<16x128xf32>
    %cst_11 = arith.constant dense<0xFF800000> : vector<16xf32>
    %14 = vector.multi_reduction <maximumf>, %13, %cst_11 [1] : vector<16x128xf32> to vector<16xf32>
    %15 = vector.shape_cast %14 : vector<16xf32> to vector<16x1xf32>
    %16 = vector.broadcast %15 : vector<16x1xf32> to vector<16x128xf32>
    %17 = arith.subf %13, %16 : vector<16x128xf32>
    %18 = math.exp %17 : vector<16x128xf32>
    %cst_12 = arith.constant dense<0.000000e+00> : vector<16xf32>
    %19 = vector.multi_reduction <add>, %18, %cst_12 [1] : vector<16x128xf32> to vector<16xf32>
    %20 = vector.shape_cast %19 : vector<16xf32> to vector<16x1xf32>
    %21 = math.log %20 : vector<16x1xf32>
    %22 = vector.broadcast %21 : vector<16x1xf32> to vector<16x128xf32>
    %23 = arith.subf %17, %22 : vector<16x128xf32>
    %c0_13 = arith.constant 0 : index
    %c0_14 = arith.constant 0 : index
    %24 = vector.load %arg6[%c0_13, %c0_14] : memref<16x128xf32, #tpu.memory_space<vmem>>, vector<16x128xf32>
    tpu.vector_store %arg6[%c0_13, %c0_14], %23 {strides = array<i32>} : memref<16x128xf32, #tpu.memory_space<vmem>>, vector<16x128xf32>,
    return
  }
  func.func @transform_0(%arg0: i32) -> (i32, i32) {
    %c0_i32 = arith.constant 0 : i32
    %c0_i32_0 = arith.constant 0 : i32
    return %arg0, %c0_i32 : i32, i32
  }
  func.func @transform_1(%arg0: i32) -> (i32, i32) {
    %c0_i32 = arith.constant 0 : i32
    %c0_i32_0 = arith.constant 0 : i32
    %c0_i32_1 = arith.constant 0 : i32
    return %c0_i32, %c0_i32_0 : i32, i32
  }
  func.func @transform_2(%arg0: i32) -> (i32, i32) {
    %c0_i32 = arith.constant 0 : i32
    %c0_i32_0 = arith.constant 0 : i32
    %c0_i32_1 = arith.constant 0 : i32
    return %c0_i32, %c0_i32_0 : i32, i32
  }
  func.func @transform_3(%arg0: i32) -> (i32, i32) {
    %c0_i32 = arith.constant 0 : i32
    %c0_i32_0 = arith.constant 0 : i32
    %c0_i32_1 = arith.constant 0 : i32
    return %c0_i32, %c0_i32_0 : i32, i32
  }
  func.func @transform_4(%arg0: i32) -> (i32, i32) {
    %c0_i32 = arith.constant 0 : i32
    %c0_i32_0 = arith.constant 0 : i32
    %c0_i32_1 = arith.constant 0 : i32
    return %c0_i32, %c0_i32_0 : i32, i32
  }
  func.func @transform_5(%arg0: i32) -> (i32, i32) {
    %c0_i32 = arith.constant 0 : i32
    %c0_i32_0 = arith.constant 0 : i32
    return %arg0, %c0_i32 : i32, i32
  }
}

</mosaic_0001>

<bundles_post_ra>
// kernel: mnist_net_forward.3
= control target key start
LH: loop header
LB: loop body
LE: loop exit
PB: predicated region body
PF: predicated region fallthrough
CT: control target
= control target key end

     0   :  { %vm535_vm0 = vcmask 261120   ;;  %s2983_s1 = inlined_call_operand.vmem [shape: bf16[32,128], index: 1, kind: input, shape index: {}]   ;;  %s2984_s0 = inlined_call_operand.vmem [shape: bf16[4,288,32], index: 0, kind: input, shape index: {}]   ;;  %s2985_s2 = inlined_call_operand.vmem [shape: f32[1,128], index: 2, kind: input, shape index: {}]   ;;  %s2986_s3 = inlined_call_operand.vmem [shape: bf16[288,128], index: 3, kind: output, shape index: {}]  }
   0x1   :  { %v2284_v0 = vld [vmem:[%s2983_s1] sm:$0xff]   ;;  %v2285_v1 = vld [vmem:[%s2983_s1 + $0x8] sm:$0xff]   ;;  %v2290_v6 = vld [vmem:[%s2984_s0 + $0x10] sm:$0xff]  }
   0x2   :  { %2132 = vmatprep.subr.bf16.mxu0 %v2284_v0  ;;  %2280 = vmatprep.subr.bf16.mxu1 %v2284_v0  ;;  %v2286_v2 = vld [vmem:[%s2984_s0] sm:$0xff]   ;;  %v2287_v4 = vld [vmem:[%s2984_s0 + $0x8] sm:$0xff]   ;;  %v2292_v7 = vld [vmem:[%s2984_s0 + $0x130] sm:$0xff]  }
   0x3   :  { %2133 = vmatpush3.bf16.msra.mxu0 %v2284_v0  ;;  %2282 = vmatpush3.bf16.msra.mxu1 %v2284_v0  ;;  %v2288_v3 = vld [vmem:[%s2984_s0 + $0x120] sm:$0xff]   ;;  %v2289_v5 = vld [vmem:[%s2984_s0 + $0x128] sm:$0xff]   ;;  %v2291_v8 = vld [vmem:[%s2984_s0 + $0x18] sm:$0xff]  }
   0x4   :  { %2134 = vmatprep.subr.bf16.mxu0 %v2285_v1  ;;  %2281 = vmatprep.subr.bf16.mxu1 %v2285_v1  ;;  %v2293_v9 = vld [vmem:[%s2984_s0 + $0x138] sm:$0xff]   ;;  %v2294_v10 = vld [vmem:[%s2984_s0 + $0x20] sm:$0xff]   ;;  %v2295_v12 = vld [vmem:[%s2984_s0 + $0x28] sm:$0xff]  }
   0x5   :  { %2136 = vmatprep.mubr.msk.bf16.mxu0 %vm535_vm0, %v2286_v2  ;;  %2208 = vmatprep.mubr.msk.bf16.mxu1 %vm535_vm0, %v2288_v3  ;;  %v2296_v11 = vld [vmem:[%s2984_s0 + $0x140] sm:$0xff]   ;;  %v2297_v13 = vld [vmem:[%s2984_s0 + $0x148] sm:$0xff]   ;;  %v2298_v14 = vld [vmem:[%s2984_s0 + $0x30] sm:$0xff]  }
   0x6   :  { %v2300_v15 = vld [vmem:[%s2984_s0 + $0x150] sm:$0xff]   ;;  %v2299_v16 = vld [vmem:[%s2984_s0 + $0x38] sm:$0xff]   ;;  %v2302_v18 = vld [vmem:[%s2984_s0 + $0x40] sm:$0xff]  }
   0x7   :  { %2135 = vmatpush3.bf16.msra.mxu0 %v2285_v1  ;;  %2283 = vmatpush3.bf16.msra.mxu1 %v2285_v1  ;;  %v2301_v17 = vld [vmem:[%s2984_s0 + $0x158] sm:$0xff]   ;;  %v2304_v19 = vld [vmem:[%s2984_s0 + $0x160] sm:$0xff]   ;;  %v2303_v20 = vld [vmem:[%s2984_s0 + $0x48] sm:$0xff]  }
   0x8   :  { %v2305_v21 = vld [vmem:[%s2984_s0 + $0x168] sm:$0xff]   ;;  %v2306_v22 = vld [vmem:[%s2984_s0 + $0x50] sm:$0xff]   ;;  %v2307_v24 = vld [vmem:[%s2984_s0 + $0x58] sm:$0xff]  }
   0x9   :  { %v2308_v23 = vld [vmem:[%s2984_s0 + $0x170] sm:$0xff]   ;;  %v2309_v25 = vld [vmem:[%s2984_s0 + $0x178] sm:$0xff]   ;;  %v2310_v26 = vld [vmem:[%s2984_s0 + $0x60] sm:$0xff]  }
   0xa   :  { %2137 = vmatmul.mubr.msk.bf16.vlgmr.msra.gmra.mrb[0].mxu0 %vm535_vm0, %v2287_v4  ;;  %2209 = vmatmul.mubr.msk.bf16.vlgmr.msra.gmra.mrb[0].mxu1 %vm535_vm0, %v2289_v5  ;;  %v2312_v27 = vld [vmem:[%s2984_s0 + $0x180] sm:$0xff]   ;;  %v2311_v28 = vld [vmem:[%s2984_s0 + $0x68] sm:$0xff]   ;;  %v2314_v30 = vld [vmem:[%s2984_s0 + $0x70] sm:$0xff]  }
   0xb   :  { %2140 = vmatprep.mubr.msk.bf16.mxu0 %vm535_vm0, %v2290_v6  ;;  %2212 = vmatprep.mubr.msk.bf16.mxu1 %vm535_vm0, %v2292_v7  ;;  %v2313_v29 = vld [vmem:[%s2984_s0 + $0x188] sm:$0xff]   ;;  %v2316_v31 = vld [vmem:[%s2984_s0 + $0x190] sm:$0xff]   ;;  %v2315_v32 = vld [vmem:[%s2984_s0 + $0x78] sm:$0xff]  }
   0xc   :  { %v2317_v33 = vld [vmem:[%s2984_s0 + $0x198] sm:$0xff]   ;;  %v2318_v34 = vld [vmem:[%s2984_s0 + $0x80] sm:$0xff]   ;;  %v2319_v36 = vld [vmem:[%s2984_s0 + $0x88] sm:$0xff]  }
   0xd   :  { %v2320_v35 = vld [vmem:[%s2984_s0 + $0x1a0] sm:$0xff]   ;;  %v2321_v37 = vld [vmem:[%s2984_s0 + $0x1a8] sm:$0xff]   ;;  %v2322_v38 = vld [vmem:[%s2984_s0 + $0x90] sm:$0xff]  }
   0xe   :  { %v2324_v39 = vld [vmem:[%s2984_s0 + $0x1b0] sm:$0xff]   ;;  %v2323_v40 = vld [vmem:[%s2984_s0 + $0x98] sm:$0xff]   ;;  %v2326_v42 = vld [vmem:[%s2984_s0 + $0xa0] sm:$0xff]  }
   0xf   :  { %v2325_v41 = vld [vmem:[%s2984_s0 + $0x1b8] sm:$0xff]   ;;  %v2328_v43 = vld [vmem:[%s2984_s0 + $0x1c0] sm:$0xff]   ;;  %v2327_v44 = vld [vmem:[%s2984_s0 + $0xa8] sm:$0xff]  }
  0x10   :  { %v2329_v45 = vld [vmem:[%s2984_s0 + $0x1c8] sm:$0xff]   ;;  %v2330_v46 = vld [vmem:[%s2984_s0 + $0xb0] sm:$0xff]   ;;  %v2331_v48 = vld [vmem:[%s2984_s0 + $0xb8] sm:$0xff]  }
  0x11   :  { %v2332_v47 = vld [vmem:[%s2984_s0 + $0x1d0] sm:$0xff]   ;;  %v2333_v49 = vld [vmem:[%s2984_s0 + $0x1d8] sm:$0xff]   ;;  %v2334_v50 = vld [vmem:[%s2984_s0 + $0xc0] sm:$0xff]  }
  0x12   :  { %2141 = vmatmul.mubr.msk.bf16.gmra.mrb[4].mxu0 %vm535_vm0, %v2291_v8  ;;  %2213 = vmatmul.mubr.msk.bf16.gmra.mrb[4].mxu1 %vm535_vm0, %v2293_v9  ;;  %v2336_v51 = vld [vmem:[%s2984_s0 + $0x1e0] sm:$0xff]   ;;  %v2335_v52 = vld [vmem:[%s2984_s0 + $0xc8] sm:$0xff]   ;;  %v2338_v54 = vld [vmem:[%s2984_s0 + $0xd0] sm:$0xff]  }
  0x13   :  { %2144 = vmatprep.mubr.msk.bf16.mxu0 %vm535_vm0, %v2294_v10  ;;  %2216 = vmatprep.mubr.msk.bf16.mxu1 %vm535_vm0, %v2296_v11  ;;  %v2337_v53 = vld [vmem:[%s2984_s0 + $0x1e8] sm:$0xff]   ;;  %v2340_v55 = vld [vmem:[%s2984_s0 + $0x1f0] sm:$0xff]   ;;  %v2339_v56 = vld [vmem:[%s2984_s0 + $0xd8] sm:$0xff]  }
  0x14   :  { %v2341_v57 = vld [vmem:[%s2984_s0 + $0x1f8] sm:$0xff]   ;;  %v2342_v58 = vld [vmem:[%s2984_s0 + $0xe0] sm:$0xff]   ;;  %v2343_v60 = vld [vmem:[%s2984_s0 + $0xe8] sm:$0xff]  }
  0x15   :  { %v2344_v59 = vld [vmem:[%s2984_s0 + $0x200] sm:$0xff]   ;;  %v2345_v61 = vld [vmem:[%s2984_s0 + $0x208] sm:$0xff]   ;;  %v2346_v62 = vld [vmem:[%s2984_s0 + $0xf0] sm:$0xff]  }
  0x16   :  { %v2348_v63 = vld [vmem:[%s2984_s0 + $0x210] sm:$0xff]   ;;  %v2347_v0 = vld [vmem:[%s2984_s0 + $0xf8] sm:$0xff]   ;;  %v2350_v2 = vld [vmem:[%s2984_s0 + $0x100] sm:$0xff]  }
  0x17   :  { %v2349_v1 = vld [vmem:[%s2984_s0 + $0x218] sm:$0xff]   ;;  %v2352_v3 = vld [vmem:[%s2984_s0 + $0x220] sm:$0xff]   ;;  %v2351_v4 = vld [vmem:[%s2984_s0 + $0x108] sm:$0xff]  }
  0x18   :  { %v2353_v5 = vld [vmem:[%s2984_s0 + $0x228] sm:$0xff]   ;;  %v2354_v6 = vld [vmem:[%s2984_s0 + $0x110] sm:$0xff]   ;;  %v2355_v8 = vld [vmem:[%s2984_s0 + $0x118] sm:$0xff]  }
  0x19   :  { %v2356_v7 = vld [vmem:[%s2984_s0 + $0x230] sm:$0xff]   ;;  %v2357_v9 = vld [vmem:[%s2984_s0 + $0x238] sm:$0xff]  }
  0x1a   :  { %2145 = vmatmul.mubr.msk.bf16.gmra.mrb[8].mxu0 %vm535_vm0, %v2295_v12  ;;  %2217 = vmatmul.mubr.msk.bf16.gmra.mrb[8].mxu1 %vm535_vm0, %v2297_v13 }
  0x1b   :  { %2148 = vmatprep.mubr.msk.bf16.mxu0 %vm535_vm0, %v2298_v14  ;;  %2220 = vmatprep.mubr.msk.bf16.mxu1 %vm535_vm0, %v2300_v15 }
  0x22   :  { %2149 = vmatmul.mubr.msk.bf16.gmra.mrb[12].mxu0 %vm535_vm0, %v2299_v16  ;;  %2221 = vmatmul.mubr.msk.bf16.gmra.mrb[12].mxu1 %vm535_vm0, %v2301_v17 }
  0x23   :  { %2152 = vmatprep.mubr.msk.bf16.mxu0 %vm535_vm0, %v2302_v18  ;;  %2224 = vmatprep.mubr.msk.bf16.mxu1 %vm535_vm0, %v2304_v19 }
  0x2a   :  { %2153 = vmatmul.mubr.msk.bf16.gmra.mrb[16].mxu0 %vm535_vm0, %v2303_v20  ;;  %2225 = vmatmul.mubr.msk.bf16.gmra.mrb[16].mxu1 %vm535_vm0, %v2305_v21 }
  0x2b   :  { %2156 = vmatprep.mubr.msk.bf16.mxu0 %vm535_vm0, %v2306_v22  ;;  %2228 = vmatprep.mubr.msk.bf16.mxu1 %vm535_vm0, %v2308_v23 }
  0x32   :  { %2157 = vmatmul.mubr.msk.bf16.gmra.mrb[20].mxu0 %vm535_vm0, %v2307_v24  ;;  %2229 = vmatmul.mubr.msk.bf16.gmra.mrb[20].mxu1 %vm535_vm0, %v2309_v25 }
  0x33   :  { %2160 = vmatprep.mubr.msk.bf16.mxu0 %vm535_vm0, %v2310_v26  ;;  %2232 = vmatprep.mubr.msk.bf16.mxu1 %vm535_vm0, %v2312_v27 }
  0x3a   :  { %2161 = vmatmul.mubr.msk.bf16.gmra.mrb[24].mxu0 %vm535_vm0, %v2311_v28  ;;  %2233 = vmatmul.mubr.msk.bf16.gmra.mrb[24].mxu1 %vm535_vm0, %v2313_v29 }
  0x3b   :  { %2164 = vmatprep.mubr.msk.bf16.mxu0 %vm535_vm0, %v2314_v30  ;;  %2236 = vmatprep.mubr.msk.bf16.mxu1 %vm535_vm0, %v2316_v31 }
  0x42   :  { %2165 = vmatmul.mubr.msk.bf16.gmra.mrb[28].mxu0 %vm535_vm0, %v2315_v32  ;;  %2237 = vmatmul.mubr.msk.bf16.gmra.mrb[28].mxu1 %vm535_vm0, %v2317_v33 }
  0x43   :  { %2168 = vmatprep.mubr.msk.bf16.mxu0 %vm535_vm0, %v2318_v34  ;;  %2240 = vmatprep.mubr.msk.bf16.mxu1 %vm535_vm0, %v2320_v35 }
  0x4a   :  { %2169 = vmatmul.mubr.msk.bf16.gmra.mrb[32].mxu0 %vm535_vm0, %v2319_v36  ;;  %2241 = vmatmul.mubr.msk.bf16.gmra.mrb[32].mxu1 %vm535_vm0, %v2321_v37 }
  0x4b   :  { %2172 = vmatprep.mubr.msk.bf16.mxu0 %vm535_vm0, %v2322_v38  ;;  %2244 = vmatprep.mubr.msk.bf16.mxu1 %vm535_vm0, %v2324_v39 }
  0x52   :  { %2173 = vmatmul.mubr.msk.bf16.gmra.mrb[36].mxu0 %vm535_vm0, %v2323_v40  ;;  %2245 = vmatmul.mubr.msk.bf16.gmra.mrb[36].mxu1 %vm535_vm0, %v2325_v41 }
  0x53   :  { %2176 = vmatprep.mubr.msk.bf16.mxu0 %vm535_vm0, %v2326_v42  ;;  %2248 = vmatprep.mubr.msk.bf16.mxu1 %vm535_vm0, %v2328_v43 }
  0x5a   :  { %2177 = vmatmul.mubr.msk.bf16.gmra.mrb[40].mxu0 %vm535_vm0, %v2327_v44  ;;  %2249 = vmatmul.mubr.msk.bf16.gmra.mrb[40].mxu1 %vm535_vm0, %v2329_v45 }
  0x5b   :  { %2180 = vmatprep.mubr.msk.bf16.mxu0 %vm535_vm0, %v2330_v46  ;;  %2252 = vmatprep.mubr.msk.bf16.mxu1 %vm535_vm0, %v2332_v47 }
  0x62   :  { %2181 = vmatmul.mubr.msk.bf16.gmra.mrb[44].mxu0 %vm535_vm0, %v2331_v48  ;;  %2253 = vmatmul.mubr.msk.bf16.gmra.mrb[44].mxu1 %vm535_vm0, %v2333_v49 }
  0x63   :  { %2184 = vmatprep.mubr.msk.bf16.mxu0 %vm535_vm0, %v2334_v50  ;;  %2256 = vmatprep.mubr.msk.bf16.mxu1 %vm535_vm0, %v2336_v51 }
  0x6a   :  { %2185 = vmatmul.mubr.msk.bf16.gmra.mrb[48].mxu0 %vm535_vm0, %v2335_v52  ;;  %2257 = vmatmul.mubr.msk.bf16.gmra.mrb[48].mxu1 %vm535_vm0, %v2337_v53 }
  0x6b   :  { %2188 = vmatprep.mubr.msk.bf16.mxu0 %vm535_vm0, %v2338_v54  ;;  %2260 = vmatprep.mubr.msk.bf16.mxu1 %vm535_vm0, %v2340_v55 }
  0x72   :  { %2189 = vmatmul.mubr.msk.bf16.gmra.mrb[52].mxu0 %vm535_vm0, %v2339_v56  ;;  %2261 = vmatmul.mubr.msk.bf16.gmra.mrb[52].mxu1 %vm535_vm0, %v2341_v57 }
  0x73   :  { %2192 = vmatprep.mubr.msk.bf16.mxu0 %vm535_vm0, %v2342_v58  ;;  %2264 = vmatprep.mubr.msk.bf16.mxu1 %vm535_vm0, %v2344_v59 }
  0x7a   :  { %2193 = vmatmul.mubr.msk.bf16.gmra.mrb[56].mxu0 %vm535_vm0, %v2343_v60  ;;  %2265 = vmatmul.mubr.msk.bf16.gmra.mrb[56].mxu1 %vm535_vm0, %v2345_v61 }
  0x7b   :  { %2196 = vmatprep.mubr.msk.bf16.mxu0 %vm535_vm0, %v2346_v62  ;;  %2268 = vmatprep.mubr.msk.bf16.mxu1 %vm535_vm0, %v2348_v63 }
  0x82   :  { %2197 = vmatmul.mubr.msk.bf16.gmra.mrb[60].mxu0 %vm535_vm0, %v2347_v0  ;;  %2269 = vmatmul.mubr.msk.bf16.gmra.mrb[60].mxu1 %vm535_vm0, %v2349_v1 }
  0x83   :  { %2200 = vmatprep.mubr.msk.bf16.mxu0 %vm535_vm0, %v2350_v2  ;;  %2272 = vmatprep.mubr.msk.bf16.mxu1 %vm535_vm0, %v2352_v3 }
  0x8a   :  { %2201 = vmatmul.mubr.msk.bf16.gmra.mrb[64].mxu0 %vm535_vm0, %v2351_v4  ;;  %2273 = vmatmul.mubr.msk.bf16.gmra.mrb[64].mxu1 %vm535_vm0, %v2353_v5 }
  0x8b   :  { %2204 = vmatprep.mubr.msk.bf16.mxu0 %vm535_vm0, %v2354_v6  ;;  %2276 = vmatprep.mubr.msk.bf16.mxu1 %vm535_vm0, %v2356_v7 }
  0x92   :  { %2205 = vmatmul.mubr.msk.bf16.gmra.mrb[68].mxu0 %vm535_vm0, %v2355_v8  ;;  %2277 = vmatmul.mubr.msk.bf16.gmra.mrb[68].mxu1 %vm535_vm0, %v2357_v9 }
  0xdd   :  { %v2672_v10 = vpop.f32.mrb[0].mxu0  ;;  %v2674_v11 = vpop.f32.mrb[0].mxu1 }
  0xde   :  { %v2676_v12 = vpop.f32.mrb[1].mxu0  ;;  %v2678_v13 = vpop.f32.mrb[1].mxu1 }
  0xdf   :  { %v2680_v14 = vpop.f32.mrb[2].mxu0  ;;  %v2682_v15 = vpop.f32.mrb[2].mxu1 }
  0xe0   :  { %v2684_v16 = vpop.f32.mrb[3].mxu0  ;;  %v2686_v17 = vpop.f32.mrb[3].mxu1 }
  0xe5   :  { %v2688_v18 = vpop.f32.mrb[4].mxu0  ;;  %v2690_v19 = vpop.f32.mrb[4].mxu1 }
  0xe6   :  { %v2692_v20 = vpop.f32.mrb[5].mxu0  ;;  %v2694_v21 = vpop.f32.mrb[5].mxu1 }
  0xe7   :  { %v2696_v22 = vpop.f32.mrb[6].mxu0  ;;  %v2698_v23 = vpop.f32.mrb[6].mxu1 }
  0xe8   :  { %v2700_v24 = vpop.f32.mrb[7].mxu0  ;;  %v2702_v25 = vpop.f32.mrb[7].mxu1 }
  0xed   :  { %v2704_v26 = vpop.f32.mrb[8].mxu0  ;;  %v2706_v27 = vpop.f32.mrb[8].mxu1 }
  0xee   :  { %v2708_v28 = vpop.f32.mrb[9].mxu0  ;;  %v2710_v29 = vpop.f32.mrb[9].mxu1 }
  0xef   :  { %v2712_v30 = vpop.f32.mrb[10].mxu0  ;;  %v2714_v31 = vpop.f32.mrb[10].mxu1 }
  0xf0   :  { %v2716_v32 = vpop.f32.mrb[11].mxu0  ;;  %v2718_v33 = vpop.f32.mrb[11].mxu1 }
  0xf5   :  { %v2720_v34 = vpop.f32.mrb[12].mxu0  ;;  %v2722_v35 = vpop.f32.mrb[12].mxu1 }
  0xf6   :  { %v2724_v36 = vpop.f32.mrb[13].mxu0  ;;  %v2726_v37 = vpop.f32.mrb[13].mxu1 }
  0xf7   :  { %v2728_v38 = vpop.f32.mrb[14].mxu0  ;;  %v2730_v39 = vpop.f32.mrb[14].mxu1 }
  0xf8   :  { %v2732_v40 = vpop.f32.mrb[15].mxu0  ;;  %v2734_v41 = vpop.f32.mrb[15].mxu1 }
  0xfd   :  { %v2736_v42 = vpop.f32.mrb[16].mxu0  ;;  %v2738_v43 = vpop.f32.mrb[16].mxu1 }
  0xfe   :  { %v2740_v44 = vpop.f32.mrb[17].mxu0  ;;  %v2742_v45 = vpop.f32.mrb[17].mxu1 }
  0xff   :  { %v2744_v46 = vpop.f32.mrb[18].mxu0  ;;  %v2746_v47 = vpop.f32.mrb[18].mxu1 }
 0x100   :  { %v2748_v48 = vpop.f32.mrb[19].mxu0  ;;  %v2750_v49 = vpop.f32.mrb[19].mxu1 }
 0x105   :  { %v2752_v50 = vpop.f32.mrb[20].mxu0  ;;  %v2754_v51 = vpop.f32.mrb[20].mxu1 }
 0x106   :  { %v2756_v52 = vpop.f32.mrb[21].mxu0  ;;  %v2758_v53 = vpop.f32.mrb[21].mxu1 }
 0x107   :  { %v2760_v54 = vpop.f32.mrb[22].mxu0  ;;  %v2762_v55 = vpop.f32.mrb[22].mxu1 }
 0x108   :  { %2987 = vst [vmem:[#allocation2_spill] sm:$0xff] %v2762_v55  ;;  %v2764_v56 = vpop.f32.mrb[23].mxu0  ;;  %v2766_v57 = vpop.f32.mrb[23].mxu1 }
 0x109   :  { %2988 = vst [vmem:[#allocation3_spill] sm:$0xff] %v2766_v57 }
 0x10d   :  { %v2768_v58 = vpop.f32.mrb[24].mxu0  ;;  %v2770_v59 = vpop.f32.mrb[24].mxu1 }
 0x10e   :  { %2989 = vst [vmem:[#allocation4_spill] sm:$0xff] %v2768_v58  ;;  %2990 = vst [vmem:[#allocation5_spill] sm:$0xff] %v2770_v59  ;;  %v2772_v60 = vpop.f32.mrb[25].mxu0  ;;  %v2774_v61 = vpop.f32.mrb[25].mxu1 }
 0x10f   :  { %2991 = vst [vmem:[#allocation6_spill] sm:$0xff] %v2772_v60  ;;  %2992 = vst [vmem:[#allocation7_spill] sm:$0xff] %v2774_v61  ;;  %v2776_v62 = vpop.f32.mrb[26].mxu0  ;;  %v2778_v63 = vpop.f32.mrb[26].mxu1 }
 0x110   :  { %2993 = vst [vmem:[#allocation8_spill] sm:$0xff] %v2776_v62  ;;  %2994 = vst [vmem:[#allocation9_spill] sm:$0xff] %v2778_v63  ;;  %v2780_v0 = vpop.f32.mrb[27].mxu0  ;;  %v2782_v1 = vpop.f32.mrb[27].mxu1 }
 0x111   :  { %2995 = vst [vmem:[#allocation10_spill] sm:$0xff] %v2780_v0  ;;  %2996 = vst [vmem:[#allocation11_spill] sm:$0xff] %v2782_v1 }
 0x115   :  { %v2784_v2 = vpop.f32.mrb[28].mxu0  ;;  %v2786_v3 = vpop.f32.mrb[28].mxu1 }
 0x116   :  { %2997 = vst [vmem:[#allocation12_spill] sm:$0xff] %v2784_v2  ;;  %2998 = vst [vmem:[#allocation13_spill] sm:$0xff] %v2786_v3  ;;  %v2788_v4 = vpop.f32.mrb[29].mxu0  ;;  %v2790_v5 = vpop.f32.mrb[29].mxu1 }
 0x117   :  { %2999 = vst [vmem:[#allocation14_spill] sm:$0xff] %v2788_v4  ;;  %3000 = vst [vmem:[#allocation15_spill] sm:$0xff] %v2790_v5  ;;  %v2792_v6 = vpop.f32.mrb[30].mxu0  ;;  %v2794_v7 = vpop.f32.mrb[30].mxu1 }
 0x118   :  { %3001 = vst [vmem:[#allocation16_spill] sm:$0xff] %v2792_v6  ;;  %3002 = vst [vmem:[#allocation17_spill] sm:$0xff] %v2794_v7  ;;  %v2796_v8 = vpop.f32.mrb[31].mxu0  ;;  %v2798_v9 = vpop.f32.mrb[31].mxu1 }
 0x119   :  { %3003 = vst [vmem:[#allocation18_spill] sm:$0xff] %v2796_v8  ;;  %3004 = vst [vmem:[#allocation19_spill] sm:$0xff] %v2798_v9 }
 0x11d   :  { %v2800_v63 = vpop.f32.mrb[32].mxu0  ;;  %v2802_v0 = vpop.f32.mrb[32].mxu1 }
 0x11e   :  { %3005 = vst [vmem:[#allocation20_spill] sm:$0xff] %v2800_v63  ;;  %3006 = vst [vmem:[#allocation21_spill] sm:$0xff] %v2802_v0  ;;  %v2804_v1 = vpop.f32.mrb[33].mxu0  ;;  %v2806_v2 = vpop.f32.mrb[33].mxu1 }
 0x11f   :  { %3007 = vst [vmem:[#allocation22_spill] sm:$0xff] %v2804_v1  ;;  %3008 = vst [vmem:[#allocation23_spill] sm:$0xff] %v2806_v2  ;;  %v2808_v3 = vpop.f32.mrb[34].mxu0  ;;  %v2810_v4 = vpop.f32.mrb[34].mxu1 }
 0x120   :  { %3009 = vst [vmem:[#allocation24_spill] sm:$0xff] %v2808_v3  ;;  %3010 = vst [vmem:[#allocation25_spill] sm:$0xff] %v2810_v4  ;;  %v2812_v5 = vpop.f32.mrb[35].mxu0  ;;  %v2814_v6 = vpop.f32.mrb[35].mxu1 }
 0x121   :  { %3011 = vst [vmem:[#allocation26_spill] sm:$0xff] %v2812_v5  ;;  %3012 = vst [vmem:[#allocation27_spill] sm:$0xff] %v2814_v6  ;;  %v2823_v6 = vld [vmem:[%s2985_s2] ss:$0 sm:$0xff] }
 0x125   :  { %v2174_v7 = vpop.f32.mrb[36].mxu0  ;;  %v2246_v8 = vpop.f32.mrb[36].mxu1 }
 0x126   :  { %v1363_v9 = vmax.f32 %v2672_v10, %v2174_v7  ;;  %v930_v61 = vpop.f32.mrb[37].mxu0  ;;  %v1218_v63 = vpop.f32.mrb[37].mxu1 }
 0x127   :  { %v1361_v0 = vmax.f32 %v2676_v12, %v930_v61  ;;  %v2175_v62 = vpop.f32.mrb[38].mxu0  ;;  %v2247_v1 = vpop.f32.mrb[38].mxu1 }
 0x128   :  { %v1399_v2 = vmax.f32 %v1363_v9, %v2674_v11  ;;  %v1364_v3 = vmax.f32 %v2680_v14, %v2175_v62  ;;  %v933_v59 = vpop.f32.mrb[39].mxu0  ;;  %v1221_v4 = vpop.f32.mrb[39].mxu1 }
 0x129   :  { %v1397_v5 = vmax.f32 %v1361_v0, %v2678_v13  ;;  %v1362_v10 = vmax.f32 %v2684_v16, %v933_v59 }
 0x12a   :  { %v1435_v7 = vmax.f32 %v1399_v2, %v2246_v8  ;;  %v1400_v12 = vmax.f32 %v1364_v3, %v2682_v15 }
 0x12b   :  { %v1433_v61 = vmax.f32 %v1397_v5, %v1218_v63  ;;  %v1398_v60 = vmax.f32 %v1362_v10, %v2686_v17 }
 0x12c   :  { %v1478_v11 = vadd.f32 %v2823_v6, %v1435_v7  ;;  %v1436_v14 = vmax.f32 %v1400_v12, %v2247_v1 }
 0x12d   :  { %v1476_v62 = vadd.f32 %v2823_v6, %v1433_v61  ;;  %v1434_v9 = vmax.f32 %v1398_v60, %v1221_v4  ;;  %v2178_v58 = vpop.f32.mrb[40].mxu0  ;;  %v2250_v57 = vpop.f32.mrb[40].mxu1 }
 0x12e   :  { %v1479_v55 = vadd.f32 %v2823_v6, %v1436_v14  ;;  %v1367_v13 = vmax.f32 %v2688_v18, %v2178_v58  ;;  %v946_v0 = vpop.f32.mrb[41].mxu0  ;;  %v1234_v16 = vpop.f32.mrb[41].mxu1  ;;  %v1514_v2 = vmax.f32 %v1478_v11, 0.0 }
 0x12f   :  { %v1477_v59 = vadd.f32 %v2823_v6, %v1434_v9  ;;  %v1365_v15 = vmax.f32 %v2692_v20, %v946_v0  ;;  %v2179_v63 = vpop.f32.mrb[42].mxu0  ;;  %v2251_v17 = vpop.f32.mrb[42].mxu1  ;;  %v1512_v8 = vmax.f32 %v1476_v62, 0.0 }
 0x130   :  { %v1515_v3 = vmax.f32 %v1479_v55, 0.0  ;;  %v1403_v1 = vmax.f32 %v1367_v13, %v2690_v19  ;;  %v1368_v60 = vmax.f32 %v2696_v22, %v2179_v63  ;;  %v949_v4 = vpop.f32.mrb[43].mxu0  ;;  %v1237_v5 = vpop.f32.mrb[43].mxu1 }
 0x131   :  { %v1513_v10 = vmax.f32 %v1477_v59, 0.0  ;;  %v1401_v18 = vmax.f32 %v1365_v15, %v2694_v21  ;;  %v1366_v58 = vmax.f32 %v2700_v24, %v949_v4 }
 0x132   :  { %v1959_v7 = vpack.c.bf16 %v1515_v3, %v1514_v2  ;;  %v1439_v12 = vmax.f32 %v1403_v1, %v2250_v57  ;;  %v1404_v20 = vmax.f32 %v1368_v60, %v2698_v23 }
 0x133   :  { %v1954_v61 = vpack.c.bf16 %v1513_v10, %v1512_v8  ;;  %v1437_v14 = vmax.f32 %v1401_v18, %v1234_v16  ;;  %v1402_v55 = vmax.f32 %v1366_v58, %v2702_v25 }
 0x134   :  { %2041 = vst [vmem:[%s2986_s3 + $0x8] sm:$0xff] %v1959_v7   ;;  %v1482_v19 = vadd.f32 %v2823_v6, %v1439_v12  ;;  %v1440_v22 = vmax.f32 %v1404_v20, %v2251_v17 }
 0x135   :  { %1955 = vst [vmem:[%s2986_s3] sm:$0xff] %v1954_v61   ;;  %v1480_v21 = vadd.f32 %v2823_v6, %v1437_v14  ;;  %v1438_v24 = vmax.f32 %v1402_v55, %v1237_v5  ;;  %v2182_v57 = vpop.f32.mrb[44].mxu0  ;;  %v2254_v23 = vpop.f32.mrb[44].mxu1 }
 0x136   :  { %v1483_v11 = vadd.f32 %v2823_v6, %v1440_v22  ;;  %v1371_v25 = vmax.f32 %v2704_v26, %v2182_v57  ;;  %v962_v62 = vpop.f32.mrb[45].mxu0  ;;  %v1250_v9 = vpop.f32.mrb[45].mxu1  ;;  %v1518_v15 = vmax.f32 %v1482_v19, 0.0 }
 0x137   :  { %v1481_v13 = vadd.f32 %v2823_v6, %v1438_v24  ;;  %v1369_v0 = vmax.f32 %v2708_v28, %v962_v62  ;;  %v2183_v16 = vpop.f32.mrb[46].mxu0  ;;  %v2255_v59 = vpop.f32.mrb[46].mxu1  ;;  %v1516_v60 = vmax.f32 %v1480_v21, 0.0 }
 0x138   :  { %v1519_v63 = vmax.f32 %v1483_v11, 0.0  ;;  %v1407_v17 = vmax.f32 %v1371_v25, %v2706_v27  ;;  %v1372_v2 = vmax.f32 %v2712_v30, %v2183_v16  ;;  %v965_v3 = vpop.f32.mrb[47].mxu0  ;;  %v1253_v1 = vpop.f32.mrb[47].mxu1 }
 0x139   :  { %v1517_v4 = vmax.f32 %v1481_v13, 0.0  ;;  %v1405_v26 = vmax.f32 %v1369_v0, %v2710_v29  ;;  %v1370_v5 = vmax.f32 %v2716_v32, %v965_v3 }
 0x13a   :  { %v1969_v8 = vpack.c.bf16 %v1519_v63, %v1518_v15  ;;  %v1443_v10 = vmax.f32 %v1407_v17, %v2254_v23  ;;  %v1408_v28 = vmax.f32 %v1372_v2, %v2714_v31 }
 0x13b   :  { %v1964_v18 = vpack.c.bf16 %v1517_v4, %v1516_v60  ;;  %v1441_v58 = vmax.f32 %v1405_v26, %v1250_v9  ;;  %v1406_v7 = vmax.f32 %v1370_v5, %v2718_v33 }
 0x13c   :  { %2043 = vst [vmem:[%s2986_s3 + $0x18] sm:$0xff] %v1969_v8   ;;  %v1486_v27 = vadd.f32 %v2823_v6, %v1443_v10  ;;  %v1444_v30 = vmax.f32 %v1408_v28, %v2255_v59 }
 0x13d   :  { %2042 = vst [vmem:[%s2986_s3 + $0x10] sm:$0xff] %v1964_v18   ;;  %v1484_v29 = vadd.f32 %v2823_v6, %v1441_v58  ;;  %v1442_v32 = vmax.f32 %v1406_v7, %v1253_v1  ;;  %v2186_v12 = vpop.f32.mrb[48].mxu0  ;;  %v2258_v31 = vpop.f32.mrb[48].mxu1 }
 0x13e   :  { %v1487_v20 = vadd.f32 %v2823_v6, %v1444_v30  ;;  %v1375_v33 = vmax.f32 %v2720_v34, %v2186_v12  ;;  %v978_v61 = vpop.f32.mrb[49].mxu0  ;;  %v1266_v14 = vpop.f32.mrb[49].mxu1  ;;  %v1522_v24 = vmax.f32 %v1486_v27, 0.0 }
 0x13f   :  { %v1485_v55 = vadd.f32 %v2823_v6, %v1442_v32  ;;  %v1373_v19 = vmax.f32 %v2724_v36, %v978_v61  ;;  %v2187_v22 = vpop.f32.mrb[50].mxu0  ;;  %v2259_v21 = vpop.f32.mrb[50].mxu1  ;;  %v1520_v9 = vmax.f32 %v1484_v29, 0.0 }
 0x140   :  { %v1523_v57 = vmax.f32 %v1487_v20, 0.0  ;;  %v1411_v23 = vmax.f32 %v1375_v33, %v2722_v35  ;;  %v1376_v11 = vmax.f32 %v2728_v38, %v2187_v22  ;;  %v981_v25 = vpop.f32.mrb[51].mxu0  ;;  %v1269_v62 = vpop.f32.mrb[51].mxu1 }
 0x141   :  { %v1521_v13 = vmax.f32 %v1485_v55, 0.0  ;;  %v1409_v34 = vmax.f32 %v1373_v19, %v2726_v37  ;;  %v1374_v0 = vmax.f32 %v2732_v40, %v981_v25 }
 0x142   :  { %v1979_v16 = vpack.c.bf16 %v1523_v57, %v1522_v24  ;;  %v1447_v59 = vmax.f32 %v1411_v23, %v2258_v31  ;;  %v1412_v36 = vmax.f32 %v1376_v11, %v2730_v39 }
 0x143   :  { %v1974_v15 = vpack.c.bf16 %v1521_v13, %v1520_v9  ;;  %v1445_v63 = vmax.f32 %v1409_v34, %v1266_v14  ;;  %v1410_v17 = vmax.f32 %v1374_v0, %v2734_v41 }
 0x144   :  { %2045 = vst [vmem:[%s2986_s3 + $0x28] sm:$0xff] %v1979_v16   ;;  %v1490_v35 = vadd.f32 %v2823_v6, %v1447_v59  ;;  %v1448_v38 = vmax.f32 %v1412_v36, %v2259_v21 }
 0x145   :  { %2044 = vst [vmem:[%s2986_s3 + $0x20] sm:$0xff] %v1974_v15   ;;  %v1488_v37 = vadd.f32 %v2823_v6, %v1445_v63  ;;  %v1446_v40 = vmax.f32 %v1410_v17, %v1269_v62  ;;  %v2190_v2 = vpop.f32.mrb[52].mxu0  ;;  %v2262_v39 = vpop.f32.mrb[52].mxu1  ;;  %v3013_v63 = vld [vmem:[#allocation2_spill] sm:$0xff] }
 0x146   :  { %v1491_v3 = vadd.f32 %v2823_v6, %v1448_v38  ;;  %v1379_v41 = vmax.f32 %v2736_v42, %v2190_v2  ;;  %v994_v1 = vpop.f32.mrb[53].mxu0  ;;  %v1282_v60 = vpop.f32.mrb[53].mxu1  ;;  %v1526_v10 = vmax.f32 %v1490_v35, 0.0  ;;  %v3014_v38 = vld [vmem:[#allocation3_spill] sm:$0xff] }
 0x147   :  { %v1489_v4 = vadd.f32 %v2823_v6, %v1446_v40  ;;  %v1377_v26 = vmax.f32 %v2740_v44, %v994_v1  ;;  %v2191_v5 = vpop.f32.mrb[54].mxu0  ;;  %v2263_v8 = vpop.f32.mrb[54].mxu1  ;;  %v1524_v30 = vmax.f32 %v1488_v37, 0.0 }
 0x148   :  { %v1527_v28 = vmax.f32 %v1491_v3, 0.0  ;;  %v1415_v18 = vmax.f32 %v1379_v41, %v2738_v43  ;;  %v1380_v58 = vmax.f32 %v2744_v46, %v2191_v5  ;;  %v997_v7 = vpop.f32.mrb[55].mxu0  ;;  %v1285_v27 = vpop.f32.mrb[55].mxu1  ;;  %v3015_v3 = vld [vmem:[#allocation4_spill] sm:$0xff] }
 0x149   :  { %v1525_v29 = vmax.f32 %v1489_v4, 0.0  ;;  %v1413_v42 = vmax.f32 %v1377_v26, %v2742_v45  ;;  %v1378_v32 = vmax.f32 %v2748_v48, %v997_v7  ;;  %v3016_v26 = vld [vmem:[#allocation6_spill] sm:$0xff] }
 0x14a   :  { %v1989_v12 = vpack.c.bf16 %v1527_v28, %v1526_v10  ;;  %v1451_v31 = vmax.f32 %v1415_v18, %v2262_v39  ;;  %v1416_v44 = vmax.f32 %v1380_v58, %v2746_v47  ;;  %v3017_v58 = vld [vmem:[#allocation5_spill] sm:$0xff] }
 0x14b   :  { %v1984_v20 = vpack.c.bf16 %v1525_v29, %v1524_v30  ;;  %v1449_v33 = vmax.f32 %v1413_v42, %v1282_v60  ;;  %v1414_v61 = vmax.f32 %v1378_v32, %v2750_v49 }
 0x14c   :  { %2047 = vst [vmem:[%s2986_s3 + $0x38] sm:$0xff] %v1989_v12   ;;  %v1494_v43 = vadd.f32 %v2823_v6, %v1451_v31  ;;  %v1452_v46 = vmax.f32 %v1416_v44, %v2263_v8  ;;  %v3019_v31 = vld [vmem:[#allocation7_spill] sm:$0xff] }
 0x14d   :  { %2046 = vst [vmem:[%s2986_s3 + $0x30] sm:$0xff] %v1984_v20   ;;  %v1492_v45 = vadd.f32 %v2823_v6, %v1449_v33  ;;  %v1450_v48 = vmax.f32 %v1414_v61, %v1285_v27  ;;  %v2194_v14 = vpop.f32.mrb[56].mxu0  ;;  %v2266_v47 = vpop.f32.mrb[56].mxu1  ;;  %v3018_v27 = vld [vmem:[#allocation8_spill] sm:$0xff]  ;;  %v3020_v20 = vld [vmem:[#allocation10_spill] sm:$0xff] }
 0x14e   :  { %v1495_v55 = vadd.f32 %v2823_v6, %v1452_v46  ;;  %v1383_v49 = vmax.f32 %v2752_v50, %v2194_v14  ;;  %v1010_v19 = vpop.f32.mrb[57].mxu0  ;;  %v1298_v22 = vpop.f32.mrb[57].mxu1  ;;  %v1530_v11 = vmax.f32 %v1494_v43, 0.0  ;;  %v3021_v46 = vld [vmem:[#allocation9_spill] sm:$0xff] }
 0x14f   :  { %v1493_v21 = vadd.f32 %v2823_v6, %v1450_v48  ;;  %v1381_v24 = vmax.f32 %v2756_v52, %v1010_v19  ;;  %v2195_v57 = vpop.f32.mrb[58].mxu0  ;;  %v2267_v23 = vpop.f32.mrb[58].mxu1  ;;  %v1528_v0 = vmax.f32 %v1492_v45, 0.0 }
 0x150   :  { %v1531_v25 = vmax.f32 %v1495_v55, 0.0  ;;  %v1419_v62 = vmax.f32 %v1383_v49, %v2754_v51  ;;  %v1384_v9 = vmax.f32 %v2760_v54, %v2195_v57  ;;  %v1013_v13 = vpop.f32.mrb[59].mxu0  ;;  %v1301_v34 = vpop.f32.mrb[59].mxu1 }
 0x151   :  { %v1529_v16 = vmax.f32 %v1493_v21, 0.0  ;;  %v1417_v50 = vmax.f32 %v1381_v24, %v2758_v53  ;;  %v1382_v59 = vmax.f32 %v2764_v56, %v1013_v13 }
 0x152   :  { %v1999_v36 = vpack.c.bf16 %v1531_v25, %v1530_v11  ;;  %v1455_v15 = vmax.f32 %v1419_v62, %v2266_v47  ;;  %v1420_v52 = vmax.f32 %v1384_v9, %v3013_v63  ;;  %v3022_v47 = vld [vmem:[#allocation11_spill] sm:$0xff]  ;;  %v3023_v11 = vld [vmem:[#allocation12_spill] sm:$0xff] }
 0x153   :  { %v1994_v17 = vpack.c.bf16 %v1529_v16, %v1528_v0  ;;  %v1453_v35 = vmax.f32 %v1417_v50, %v1298_v22  ;;  %v1418_v37 = vmax.f32 %v1382_v59, %v3014_v38 }
 0x154   :  { %2049 = vst [vmem:[%s2986_s3 + $0x48] sm:$0xff] %v1999_v36   ;;  %v1498_v51 = vadd.f32 %v2823_v6, %v1455_v15  ;;  %v1456_v54 = vmax.f32 %v1420_v52, %v2267_v23  ;;  %v3025_v15 = vld [vmem:[#allocation13_spill] sm:$0xff]  ;;  %v3026_v52 = vld [vmem:[#allocation16_spill] sm:$0xff] }
 0x155   :  { %2048 = vst [vmem:[%s2986_s3 + $0x40] sm:$0xff] %v1994_v17   ;;  %v1496_v53 = vadd.f32 %v2823_v6, %v1453_v35  ;;  %v1454_v56 = vmax.f32 %v1418_v37, %v1301_v34  ;;  %v2198_v40 = vpop.f32.mrb[60].mxu0  ;;  %v2270_v2 = vpop.f32.mrb[60].mxu1  ;;  %v3024_v34 = vld [vmem:[#allocation14_spill] sm:$0xff] }
 0x156   :  { %v1499_v39 = vadd.f32 %v2823_v6, %v1456_v54  ;;  %v1387_v41 = vmax.f32 %v3015_v3, %v2198_v40  ;;  %v1026_v1 = vpop.f32.mrb[61].mxu0  ;;  %v1314_v60 = vpop.f32.mrb[61].mxu1  ;;  %v1534_v28 = vmax.f32 %v1498_v51, 0.0  ;;  %v3027_v54 = vld [vmem:[#allocation15_spill] sm:$0xff]  ;;  %v3029_v3 = vld [vmem:[#allocation17_spill] sm:$0xff] }
 0x157   :  { %v1497_v4 = vadd.f32 %v2823_v6, %v1454_v56  ;;  %v1385_v5 = vmax.f32 %v3016_v26, %v1026_v1  ;;  %v2199_v8 = vpop.f32.mrb[62].mxu0  ;;  %v2271_v10 = vpop.f32.mrb[62].mxu1  ;;  %v1532_v32 = vmax.f32 %v1496_v53, 0.0  ;;  %v3028_v56 = vld [vmem:[#allocation18_spill] sm:$0xff] }
 0x158   :  { %v1535_v18 = vmax.f32 %v1499_v39, 0.0  ;;  %v1423_v7 = vmax.f32 %v1387_v41, %v3017_v58  ;;  %v1388_v30 = vmax.f32 %v3018_v27, %v2199_v8  ;;  %v1029_v29 = vpop.f32.mrb[63].mxu0  ;;  %v1317_v42 = vpop.f32.mrb[63].mxu1  ;;  %v3031_v27 = vld [vmem:[#allocation20_spill] sm:$0xff] }
 0x159   :  { %v1533_v12 = vmax.f32 %v1497_v4, 0.0  ;;  %v1421_v44 = vmax.f32 %v1385_v5, %v3019_v31  ;;  %v1386_v33 = vmax.f32 %v3020_v20, %v1029_v29  ;;  %v3030_v4 = vld [vmem:[#allocation19_spill] sm:$0xff] }
 0x15a   :  { %v2009_v61 = vpack.c.bf16 %v1535_v18, %v1534_v28  ;;  %v1459_v43 = vmax.f32 %v1423_v7, %v2270_v2  ;;  %v1424_v45 = vmax.f32 %v1388_v30, %v3021_v46 }
 0x15b   :  { %v2004_v48 = vpack.c.bf16 %v1533_v12, %v1532_v32  ;;  %v1457_v14 = vmax.f32 %v1421_v44, %v1314_v60  ;;  %v1422_v55 = vmax.f32 %v1386_v33, %v3022_v47  ;;  %v3032_v12 = vld [vmem:[#allocation22_spill] sm:$0xff] }
 0x15c   :  { %2051 = vst [vmem:[%s2986_s3 + $0x58] sm:$0xff] %v2009_v61   ;;  %v1502_v49 = vadd.f32 %v2823_v6, %v1459_v43  ;;  %v1460_v19 = vmax.f32 %v1424_v45, %v2271_v10  ;;  %v3033_v43 = vld [vmem:[#allocation21_spill] sm:$0xff]  ;;  %v3034_v45 = vld [vmem:[#allocation24_spill] sm:$0xff] }
 0x15d   :  { %2050 = vst [vmem:[%s2986_s3 + $0x50] sm:$0xff] %v2004_v48   ;;  %v1500_v22 = vadd.f32 %v2823_v6, %v1457_v14  ;;  %v1458_v21 = vmax.f32 %v1422_v55, %v1317_v42  ;;  %v2202_v24 = vpop.f32.mrb[64].mxu0  ;;  %v2274_v57 = vpop.f32.mrb[64].mxu1 }
 0x15e   :  { %v1503_v23 = vadd.f32 %v2823_v6, %v1460_v19  ;;  %v1391_v25 = vmax.f32 %v3023_v11, %v2202_v24  ;;  %v1042_v62 = vpop.f32.mrb[65].mxu0  ;;  %v1330_v9 = vpop.f32.mrb[65].mxu1  ;;  %v1538_v59 = vmax.f32 %v1502_v49, 0.0  ;;  %v3035_v19 = vld [vmem:[#allocation23_spill] sm:$0xff]  ;;  %v3037_v11 = vld [vmem:[#allocation25_spill] sm:$0xff] }
 0x15f   :  { %v1501_v13 = vadd.f32 %v2823_v6, %v1458_v21  ;;  %v1389_v0 = vmax.f32 %v3024_v34, %v1042_v62  ;;  %v2203_v16 = vpop.f32.mrb[66].mxu0  ;;  %v2275_v50 = vpop.f32.mrb[66].mxu1  ;;  %v1536_v37 = vmax.f32 %v1500_v22, 0.0  ;;  %v3036_v21 = vld [vmem:[#allocation26_spill] sm:$0xff] }
 0x160   :  { %v1539_v36 = vmax.f32 %v1503_v23, 0.0  ;;  %v1427_v63 = vmax.f32 %v1391_v25, %v3025_v15  ;;  %v1392_v17 = vmax.f32 %v3026_v52, %v2203_v16  ;;  %v1045_v35 = vpop.f32.mrb[67].mxu0  ;;  %v1333_v38 = vpop.f32.mrb[67].mxu1 }
 0x161   :  { %v1537_v51 = vmax.f32 %v1501_v13, 0.0  ;;  %v1425_v53 = vmax.f32 %v1389_v0, %v3027_v54  ;;  %v1390_v40 = vmax.f32 %v3028_v56, %v1045_v35  ;;  %v3038_v13 = vld [vmem:[#allocation27_spill] sm:$0xff] }
 0x162   :  { %v2019_v2 = vpack.c.bf16 %v1539_v36, %v1538_v59  ;;  %v1463_v39 = vmax.f32 %v1427_v63, %v2274_v57  ;;  %v1428_v41 = vmax.f32 %v1392_v17, %v3029_v3 }
 0x163   :  { %v2014_v1 = vpack.c.bf16 %v1537_v51, %v1536_v37  ;;  %v1461_v60 = vmax.f32 %v1425_v53, %v1330_v9  ;;  %v1426_v26 = vmax.f32 %v1390_v40, %v3030_v4 }
 0x164   :  { %2053 = vst [vmem:[%s2986_s3 + $0x68] sm:$0xff] %v2019_v2   ;;  %v1506_v5 = vadd.f32 %v2823_v6, %v1463_v39  ;;  %v1464_v8 = vmax.f32 %v1428_v41, %v2275_v50 }
 0x165   :  { %2052 = vst [vmem:[%s2986_s3 + $0x60] sm:$0xff] %v2014_v1   ;;  %v1504_v10 = vadd.f32 %v2823_v6, %v1461_v60  ;;  %v1462_v28 = vmax.f32 %v1426_v26, %v1333_v38  ;;  %v2206_v18 = vpop.f32.mrb[68].mxu0  ;;  %v2278_v58 = vpop.f32.mrb[68].mxu1 }
 0x166   :  { %v1507_v7 = vadd.f32 %v2823_v6, %v1464_v8  ;;  %v1395_v30 = vmax.f32 %v3031_v27, %v2206_v18  ;;  %v1058_v29 = vpop.f32.mrb[69].mxu0  ;;  %v1346_v42 = vpop.f32.mrb[69].mxu1  ;;  %v1542_v33 = vmax.f32 %v1506_v5, 0.0 }
 0x167   :  { %v1505_v32 = vadd.f32 %v2823_v6, %v1462_v28  ;;  %v1393_v31 = vmax.f32 %v3032_v12, %v1058_v29  ;;  %v2207_v44 = vpop.f32.mrb[70].mxu0  ;;  %v2279_v20 = vpop.f32.mrb[70].mxu1  ;;  %v1540_v55 = vmax.f32 %v1504_v10, 0.0 }
 0x168   :  { %v1543_v61 = vmax.f32 %v1507_v7, 0.0  ;;  %v1431_v46 = vmax.f32 %v1395_v30, %v3033_v43  ;;  %v1396_v48 = vmax.f32 %v3034_v45, %v2207_v44  ;;  %v1061_v14 = vpop.f32.mrb[71].mxu0  ;;  %v1349_v47 = vpop.f32.mrb[71].mxu1 }
 0x169   :  { %v1541_v49 = vmax.f32 %v1505_v32, 0.0  ;;  %v1429_v22 = vmax.f32 %v1393_v31, %v3035_v19  ;;  %v1394_v24 = vmax.f32 %v3036_v21, %v1061_v14 }
 0x16a   :  { %v2029_v57 = vpack.c.bf16 %v1543_v61, %v1542_v33  ;;  %v1467_v23 = vmax.f32 %v1431_v46, %v2278_v58  ;;  %v1432_v25 = vmax.f32 %v1396_v48, %v3037_v11 }
 0x16b   :  { %v2024_v62 = vpack.c.bf16 %v1541_v49, %v1540_v55  ;;  %v1465_v9 = vmax.f32 %v1429_v22, %v1346_v42  ;;  %v1430_v34 = vmax.f32 %v1394_v24, %v3038_v13 }
 0x16c   :  { %2055 = vst [vmem:[%s2986_s3 + $0x78] sm:$0xff] %v2029_v57   ;;  %v1510_v0 = vadd.f32 %v2823_v6, %v1467_v23  ;;  %v1468_v16 = vmax.f32 %v1432_v25, %v2279_v20 }
 0x16d   :  { %2054 = vst [vmem:[%s2986_s3 + $0x70] sm:$0xff] %v2024_v62   ;;  %v1508_v50 = vadd.f32 %v2823_v6, %v1465_v9  ;;  %v1466_v59 = vmax.f32 %v1430_v34, %v1349_v47 }
 0x16e   :  { %v1511_v36 = vadd.f32 %v2823_v6, %v1468_v16  ;;  %v1546_v63 = vmax.f32 %v1510_v0, 0.0 }
 0x16f   :  { %v1509_v15 = vadd.f32 %v2823_v6, %v1466_v59  ;;  %v1544_v17 = vmax.f32 %v1508_v50, 0.0 }
 0x170   :  { %v1547_v52 = vmax.f32 %v1511_v36, 0.0 }
 0x171   :  { %v1545_v35 = vmax.f32 %v1509_v15, 0.0 }
 0x172   :  { %v2039_v38 = vpack.c.bf16 %v1547_v52, %v1546_v63 }
 0x173   :  { %v2034_v37 = vpack.c.bf16 %v1545_v35, %v1544_v17 }
 0x174   :  { %2057 = vst [vmem:[%s2986_s3 + $0x88] sm:$0xff] %v2039_v38  }
 0x175   :  { %2056 = vst [vmem:[%s2986_s3 + $0x80] sm:$0xff] %v2034_v37  }

// kernel: mnist_net_forward.4
= control target key start
LH: loop header
LB: loop body
LE: loop exit
PB: predicated region body
PF: predicated region fallthrough
CT: control target
= control target key end

     0   :  { %s1233_s1 = inlined_call_operand.vmem [shape: bf16[512,128], index: 1, kind: input, shape index: {}]   ;;  %s1234_s0 = inlined_call_operand.vmem [shape: bf16[4,32,512], index: 0, kind: input, shape index: {}]   ;;  %s1235_s2 = inlined_call_operand.vmem [shape: f32[1,128], index: 2, kind: input, shape index: {}]   ;;  %s1236_s3 = inlined_call_operand.vmem [shape: bf16[32,128], index: 3, kind: output, shape index: {}]  }
   0x1   :  { %v920_v0 = vld [vmem:[%s1233_s1 + $0x40] sm:$0xff]   ;;  %v924_v4 = vld [vmem:[%s1233_s1 + $0x48] sm:$0xff]   ;;  %v928_v8 = vld [vmem:[%s1233_s1 + $0x50] sm:$0xff]  }
   0x2   :  { %v921_v1 = vld [vmem:[%s1233_s1 + $0xc0] sm:$0xff]   ;;  %792 = vmatprep.subr.bf16.mxu0 %v920_v0  ;;  %v925_v5 = vld [vmem:[%s1233_s1 + $0xc8] sm:$0xff]   ;;  %v929_v9 = vld [vmem:[%s1233_s1 + $0xd0] sm:$0xff]  }
   0x3   :  { %v922_v2 = vld [vmem:[%s1233_s1] sm:$0xff]   ;;  %856 = vmatprep.subr.bf16.mxu1 %v921_v1  ;;  %v926_v6 = vld [vmem:[%s1233_s1 + $0x8] sm:$0xff]   ;;  %v930_v10 = vld [vmem:[%s1233_s1 + $0x10] sm:$0xff]  }
   0x4   :  { %v923_v3 = vld [vmem:[%s1233_s1 + $0x80] sm:$0xff]   ;;  %793 = vmatpush3.bf16.msra.mxu0 %v922_v2  ;;  %v927_v7 = vld [vmem:[%s1233_s1 + $0x88] sm:$0xff]   ;;  %v931_v11 = vld [vmem:[%s1233_s1 + $0x90] sm:$0xff]  }
   0x5   :  { %857 = vmatpush3.bf16.msra.mxu1 %v923_v3  ;;  %794 = vmatprep.subr.bf16.mxu0 %v924_v4  ;;  %v932_v12 = vld [vmem:[%s1233_s1 + $0x58] sm:$0xff]   ;;  %v936_v16 = vld [vmem:[%s1233_s1 + $0x60] sm:$0xff]   ;;  %v940_v20 = vld [vmem:[%s1233_s1 + $0x68] sm:$0xff]  }
   0x6   :  { %858 = vmatprep.subr.bf16.mxu1 %v925_v5  ;;  %v933_v13 = vld [vmem:[%s1233_s1 + $0xd8] sm:$0xff]   ;;  %v937_v17 = vld [vmem:[%s1233_s1 + $0xe0] sm:$0xff]   ;;  %v941_v21 = vld [vmem:[%s1233_s1 + $0xe8] sm:$0xff]  }
   0x7   :  { %v934_v14 = vld [vmem:[%s1233_s1 + $0x18] sm:$0xff]   ;;  %v938_v18 = vld [vmem:[%s1233_s1 + $0x20] sm:$0xff]   ;;  %v942_v22 = vld [vmem:[%s1233_s1 + $0x28] sm:$0xff]  }
   0x8   :  { %795 = vmatpush3.bf16.msra.mxu0 %v926_v6  ;;  %v935_v15 = vld [vmem:[%s1233_s1 + $0x98] sm:$0xff]   ;;  %v939_v19 = vld [vmem:[%s1233_s1 + $0xa0] sm:$0xff]   ;;  %v943_v23 = vld [vmem:[%s1233_s1 + $0xa8] sm:$0xff]  }
   0x9   :  { %859 = vmatpush3.bf16.msra.mxu1 %v927_v7  ;;  %796 = vmatprep.subr.bf16.mxu0 %v928_v8  ;;  %v944_v24 = vld [vmem:[%s1233_s1 + $0x70] sm:$0xff]   ;;  %v948_v28 = vld [vmem:[%s1233_s1 + $0x78] sm:$0xff]  }
   0xa   :  { %860 = vmatprep.subr.bf16.mxu1 %v929_v9  ;;  %v945_v25 = vld [vmem:[%s1233_s1 + $0xf0] sm:$0xff]   ;;  %v949_v29 = vld [vmem:[%s1233_s1 + $0xf8] sm:$0xff]  }
   0xb   :  { %v946_v26 = vld [vmem:[%s1233_s1 + $0x30] sm:$0xff]   ;;  %v950_v30 = vld [vmem:[%s1233_s1 + $0x38] sm:$0xff]  }
   0xc   :  { %797 = vmatpush3.bf16.msra.mxu0 %v930_v10  ;;  %v947_v27 = vld [vmem:[%s1233_s1 + $0xb0] sm:$0xff]   ;;  %v951_v31 = vld [vmem:[%s1233_s1 + $0xb8] sm:$0xff]  }
   0xd   :  { %861 = vmatpush3.bf16.msra.mxu1 %v931_v11  ;;  %798 = vmatprep.subr.bf16.mxu0 %v932_v12  ;;  %v952_v32 = vld [vmem:[%s1234_s0] ss:$16 sps:$4 sm:$0xff]   ;;  %v954_v33 = vld [vmem:[%s1234_s0 + $0x4] ss:$16 sps:$4 sm:$0xff]   ;;  %v955_v34 = vld [vmem:[%s1234_s0 + $0x8] ss:$16 sps:$4 sm:$0xff]  }
   0xe   :  { %862 = vmatprep.subr.bf16.mxu1 %v933_v13  ;;  %v957_v35 = vld [vmem:[%s1234_s0 + $0xc] ss:$16 sps:$4 sm:$0xff]   ;;  %495 = vmatprep.mubr.bf16.mxu0 %v954_v33  ;;  %v958_v36 = vld [vmem:[%s1234_s0 + $0x24] ss:$16 sps:$4 sm:$0xff]   ;;  %v962_v38 = vld [vmem:[%s1234_s0 + $0x20] ss:$16 sps:$4 sm:$0xff]  }
   0xf   :  { %592 = vmatprep.mubr.bf16.mxu1 %v957_v35  ;;  %v960_v37 = vld [vmem:[%s1234_s0 + $0x2c] ss:$16 sps:$4 sm:$0xff]   ;;  %v963_v39 = vld [vmem:[%s1234_s0 + $0x28] ss:$16 sps:$4 sm:$0xff]   ;;  %v964_v40 = vld [vmem:[%s1234_s0 + $0x44] ss:$16 sps:$4 sm:$0xff]  }
  0x10   :  { %799 = vmatpush3.bf16.msra.mxu0 %v934_v14  ;;  %v966_v41 = vld [vmem:[%s1234_s0 + $0x4c] ss:$16 sps:$4 sm:$0xff]   ;;  %v968_v42 = vld [vmem:[%s1234_s0 + $0x40] ss:$16 sps:$4 sm:$0xff]   ;;  %v969_v43 = vld [vmem:[%s1234_s0 + $0x48] ss:$16 sps:$4 sm:$0xff]  }
  0x11   :  { %863 = vmatpush3.bf16.msra.mxu1 %v935_v15  ;;  %800 = vmatprep.subr.bf16.mxu0 %v936_v16  ;;  %v970_v44 = vld [vmem:[%s1234_s0 + $0x64] ss:$16 sps:$4 sm:$0xff]   ;;  %v972_v45 = vld [vmem:[%s1234_s0 + $0x6c] ss:$16 sps:$4 sm:$0xff]   ;;  %v974_v46 = vld [vmem:[%s1234_s0 + $0x60] ss:$16 sps:$4 sm:$0xff]  }
  0x12   :  { %864 = vmatprep.subr.bf16.mxu1 %v937_v17  ;;  %v975_v47 = vld [vmem:[%s1234_s0 + $0x68] ss:$16 sps:$4 sm:$0xff]   ;;  %v976_v48 = vld [vmem:[%s1234_s0 + $0x84] ss:$16 sps:$4 sm:$0xff]   ;;  %v978_v49 = vld [vmem:[%s1234_s0 + $0x8c] ss:$16 sps:$4 sm:$0xff]  }
  0x13   :  { %v980_v50 = vld [vmem:[%s1234_s0 + $0x80] ss:$16 sps:$4 sm:$0xff]   ;;  %v981_v51 = vld [vmem:[%s1234_s0 + $0x88] ss:$16 sps:$4 sm:$0xff]   ;;  %v982_v52 = vld [vmem:[%s1234_s0 + $0xa4] ss:$16 sps:$4 sm:$0xff]  }
  0x14   :  { %801 = vmatpush3.bf16.msra.mxu0 %v938_v18  ;;  %v984_v53 = vld [vmem:[%s1234_s0 + $0xac] ss:$16 sps:$4 sm:$0xff]   ;;  %v986_v54 = vld [vmem:[%s1234_s0 + $0xa0] ss:$16 sps:$4 sm:$0xff]   ;;  %v987_v55 = vld [vmem:[%s1234_s0 + $0xa8] ss:$16 sps:$4 sm:$0xff]  }
  0x15   :  { %865 = vmatpush3.bf16.msra.mxu1 %v939_v19  ;;  %802 = vmatprep.subr.bf16.mxu0 %v940_v20  ;;  %v988_v56 = vld [vmem:[%s1234_s0 + $0xc4] ss:$16 sps:$4 sm:$0xff]   ;;  %v990_v57 = vld [vmem:[%s1234_s0 + $0xcc] ss:$16 sps:$4 sm:$0xff]   ;;  %v992_v58 = vld [vmem:[%s1234_s0 + $0xc0] ss:$16 sps:$4 sm:$0xff]  }
  0x16   :  { %866 = vmatprep.subr.bf16.mxu1 %v941_v21  ;;  %v993_v59 = vld [vmem:[%s1234_s0 + $0xc8] ss:$16 sps:$4 sm:$0xff]   ;;  %v994_v60 = vld [vmem:[%s1234_s0 + $0xe4] ss:$16 sps:$4 sm:$0xff]   ;;  %v996_v61 = vld [vmem:[%s1234_s0 + $0xec] ss:$16 sps:$4 sm:$0xff]  }
  0x17   :  { %v998_v62 = vld [vmem:[%s1234_s0 + $0xe0] ss:$16 sps:$4 sm:$0xff]   ;;  %v999_v63 = vld [vmem:[%s1234_s0 + $0xe8] ss:$16 sps:$4 sm:$0xff]  }
  0x18   :  { %803 = vmatpush3.bf16.msra.mxu0 %v942_v22 }
  0x19   :  { %867 = vmatpush3.bf16.msra.mxu1 %v943_v23  ;;  %804 = vmatprep.subr.bf16.mxu0 %v944_v24 }
  0x1a   :  { %868 = vmatprep.subr.bf16.mxu1 %v945_v25 }
  0x1c   :  { %805 = vmatpush3.bf16.msra.mxu0 %v946_v26 }
  0x1d   :  { %869 = vmatpush3.bf16.msra.mxu1 %v947_v27  ;;  %806 = vmatprep.subr.bf16.mxu0 %v948_v28 }
  0x1e   :  { %870 = vmatprep.subr.bf16.mxu1 %v949_v29 }
  0x20   :  { %807 = vmatpush3.bf16.msra.mxu0 %v950_v30 }
  0x21   :  { %871 = vmatpush3.bf16.msra.mxu1 %v951_v31 }
  0x23   :  { %496 = vmatmul.mubr.bf16.vlgmr.msra.gmra.mrb[0].mxu0 %v952_v32 }
  0x24   :  { %593 = vmatmul.mubr.bf16.vlgmr.msra.gmra.mrb[0].mxu1 %v955_v34  ;;  %503 = vmatprep.mubr.bf16.mxu0 %v958_v36 }
  0x25   :  { %600 = vmatprep.mubr.bf16.mxu1 %v960_v37 }
  0x2b   :  { %504 = vmatmul.mubr.bf16.gmra.mrb[4].mxu0 %v962_v38 }
  0x2c   :  { %601 = vmatmul.mubr.bf16.gmra.mrb[4].mxu1 %v963_v39  ;;  %511 = vmatprep.mubr.bf16.mxu0 %v964_v40 }
  0x2d   :  { %608 = vmatprep.mubr.bf16.mxu1 %v966_v41 }
  0x33   :  { %512 = vmatmul.mubr.bf16.gmra.mrb[8].mxu0 %v968_v42 }
  0x34   :  { %609 = vmatmul.mubr.bf16.gmra.mrb[8].mxu1 %v969_v43  ;;  %519 = vmatprep.mubr.bf16.mxu0 %v970_v44 }
  0x35   :  { %616 = vmatprep.mubr.bf16.mxu1 %v972_v45 }
  0x3b   :  { %520 = vmatmul.mubr.bf16.gmra.mrb[12].mxu0 %v974_v46 }
  0x3c   :  { %617 = vmatmul.mubr.bf16.gmra.mrb[12].mxu1 %v975_v47  ;;  %527 = vmatprep.mubr.bf16.mxu0 %v976_v48 }
  0x3d   :  { %624 = vmatprep.mubr.bf16.mxu1 %v978_v49 }
  0x43   :  { %528 = vmatmul.mubr.bf16.gmra.mrb[16].mxu0 %v980_v50 }
  0x44   :  { %625 = vmatmul.mubr.bf16.gmra.mrb[16].mxu1 %v981_v51  ;;  %535 = vmatprep.mubr.bf16.mxu0 %v982_v52 }
  0x45   :  { %632 = vmatprep.mubr.bf16.mxu1 %v984_v53 }
  0x4b   :  { %536 = vmatmul.mubr.bf16.gmra.mrb[20].mxu0 %v986_v54 }
  0x4c   :  { %633 = vmatmul.mubr.bf16.gmra.mrb[20].mxu1 %v987_v55  ;;  %543 = vmatprep.mubr.bf16.mxu0 %v988_v56 }
  0x4d   :  { %640 = vmatprep.mubr.bf16.mxu1 %v990_v57 }
  0x53   :  { %544 = vmatmul.mubr.bf16.gmra.mrb[24].mxu0 %v992_v58 }
  0x54   :  { %641 = vmatmul.mubr.bf16.gmra.mrb[24].mxu1 %v993_v59  ;;  %551 = vmatprep.mubr.bf16.mxu0 %v994_v60 }
  0x55   :  { %648 = vmatprep.mubr.bf16.mxu1 %v996_v61 }
  0x5b   :  { %552 = vmatmul.mubr.bf16.gmra.mrb[28].mxu0 %v998_v62 }
  0x5c   :  { %649 = vmatmul.mubr.bf16.gmra.mrb[28].mxu1 %v999_v63 }
  0xf6   :  { %v808_v0 = vpop.f32.mrb[0].mxu0 }
  0xf7   :  { %v872_v1 = vpop.f32.mrb[0].mxu1  ;;  %v809_v2 = vpop.f32.mrb[1].mxu0 }
  0xf8   :  { %v810_v3 = vadd.f32 %v809_v2, %v808_v0  ;;  %v873_v4 = vpop.f32.mrb[1].mxu1  ;;  %v811_v5 = vpop.f32.mrb[2].mxu0 }
  0xf9   :  { %v874_v6 = vadd.f32 %v873_v4, %v872_v1  ;;  %v875_v7 = vpop.f32.mrb[2].mxu1  ;;  %v812_v8 = vpop.f32.mrb[3].mxu0 }
  0xfa   :  { %v813_v9 = vadd.f32 %v812_v8, %v811_v5  ;;  %v876_v10 = vpop.f32.mrb[3].mxu1 }
  0xfb   :  { %v1212_v11 = vadd.f32 %v874_v6, %v810_v3  ;;  %v877_v12 = vadd.f32 %v876_v10, %v875_v7 }
  0xfd   :  { %v1214_v13 = vadd.f32 %v877_v12, %v813_v9 }
  0xfe   :  { %v814_v14 = vpop.f32.mrb[4].mxu0 }
  0xff   :  { %v878_v15 = vpop.f32.mrb[4].mxu1  ;;  %v815_v16 = vpop.f32.mrb[5].mxu0 }
 0x100   :  { %v816_v17 = vadd.f32 %v815_v16, %v814_v14  ;;  %v879_v18 = vpop.f32.mrb[5].mxu1  ;;  %v817_v19 = vpop.f32.mrb[6].mxu0 }
 0x101   :  { %v880_v20 = vadd.f32 %v879_v18, %v878_v15  ;;  %v881_v21 = vpop.f32.mrb[6].mxu1  ;;  %v818_v22 = vpop.f32.mrb[7].mxu0 }
 0x102   :  { %v819_v23 = vadd.f32 %v818_v22, %v817_v19  ;;  %v882_v24 = vpop.f32.mrb[7].mxu1 }
 0x103   :  { %v1216_v25 = vadd.f32 %v880_v20, %v816_v17  ;;  %v883_v26 = vadd.f32 %v882_v24, %v881_v21 }
 0x105   :  { %v1218_v27 = vadd.f32 %v883_v26, %v819_v23 }
 0x106   :  { %v820_v28 = vpop.f32.mrb[8].mxu0 }
 0x107   :  { %v884_v29 = vpop.f32.mrb[8].mxu1  ;;  %v821_v30 = vpop.f32.mrb[9].mxu0 }
 0x108   :  { %v822_v31 = vadd.f32 %v821_v30, %v820_v28  ;;  %v885_v32 = vpop.f32.mrb[9].mxu1  ;;  %v823_v33 = vpop.f32.mrb[10].mxu0 }
 0x109   :  { %v886_v34 = vadd.f32 %v885_v32, %v884_v29  ;;  %v887_v35 = vpop.f32.mrb[10].mxu1  ;;  %v824_v36 = vpop.f32.mrb[11].mxu0 }
 0x10a   :  { %v825_v37 = vadd.f32 %v824_v36, %v823_v33  ;;  %v888_v38 = vpop.f32.mrb[11].mxu1 }
 0x10b   :  { %v611_v39 = vadd.f32 %v886_v34, %v822_v31  ;;  %v889_v40 = vadd.f32 %v888_v38, %v887_v35 }
 0x10d   :  { %v657_v41 = vmax.f32 %v1212_v11, %v611_v39  ;;  %v614_v42 = vadd.f32 %v889_v40, %v825_v37 }
 0x10e   :  { %v826_v43 = vpop.f32.mrb[12].mxu0 }
 0x10f   :  { %v658_v44 = vmax.f32 %v1214_v13, %v614_v42  ;;  %v890_v45 = vpop.f32.mrb[12].mxu1  ;;  %v827_v46 = vpop.f32.mrb[13].mxu0 }
 0x110   :  { %v828_v47 = vadd.f32 %v827_v46, %v826_v43  ;;  %v891_v48 = vpop.f32.mrb[13].mxu1  ;;  %v829_v49 = vpop.f32.mrb[14].mxu0 }
 0x111   :  { %v892_v50 = vadd.f32 %v891_v48, %v890_v45  ;;  %v893_v51 = vpop.f32.mrb[14].mxu1  ;;  %v830_v52 = vpop.f32.mrb[15].mxu0 }
 0x112   :  { %v831_v53 = vadd.f32 %v830_v52, %v829_v49  ;;  %v894_v54 = vpop.f32.mrb[15].mxu1 }
 0x113   :  { %v619_v55 = vadd.f32 %v892_v50, %v828_v47  ;;  %v895_v56 = vadd.f32 %v894_v54, %v893_v51 }
 0x115   :  { %v659_v57 = vmax.f32 %v1216_v25, %v619_v55  ;;  %v622_v58 = vadd.f32 %v895_v56, %v831_v53 }
 0x116   :  { %v832_v59 = vpop.f32.mrb[16].mxu0 }
 0x117   :  { %v660_v60 = vmax.f32 %v1218_v27, %v622_v58  ;;  %v896_v61 = vpop.f32.mrb[16].mxu1  ;;  %v833_v62 = vpop.f32.mrb[17].mxu0 }
 0x118   :  { %v834_v63 = vadd.f32 %v833_v62, %v832_v59  ;;  %v897_v0 = vpop.f32.mrb[17].mxu1  ;;  %v835_v1 = vpop.f32.mrb[18].mxu0 }
 0x119   :  { %v898_v2 = vadd.f32 %v897_v0, %v896_v61  ;;  %v899_v3 = vpop.f32.mrb[18].mxu1  ;;  %v836_v4 = vpop.f32.mrb[19].mxu0 }
 0x11a   :  { %v837_v5 = vadd.f32 %v836_v4, %v835_v1  ;;  %v900_v6 = vpop.f32.mrb[19].mxu1 }
 0x11b   :  { %v627_v7 = vadd.f32 %v898_v2, %v834_v63  ;;  %v901_v8 = vadd.f32 %v900_v6, %v899_v3 }
 0x11d   :  { %v661_v9 = vmax.f32 %v657_v41, %v627_v7  ;;  %v630_v10 = vadd.f32 %v901_v8, %v837_v5  ;;  %v772_v41 = vld [vmem:[%s1235_s2] ss:$0 sm:$0xff] }
 0x11e   :  { %v838_v11 = vpop.f32.mrb[20].mxu0 }
 0x11f   :  { %v662_v12 = vmax.f32 %v658_v44, %v630_v10  ;;  %v902_v13 = vpop.f32.mrb[20].mxu1  ;;  %v839_v14 = vpop.f32.mrb[21].mxu0 }
 0x120   :  { %v840_v15 = vadd.f32 %v839_v14, %v838_v11  ;;  %v903_v16 = vpop.f32.mrb[21].mxu1  ;;  %v841_v17 = vpop.f32.mrb[22].mxu0 }
 0x121   :  { %v904_v18 = vadd.f32 %v903_v16, %v902_v13  ;;  %v905_v19 = vpop.f32.mrb[22].mxu1  ;;  %v842_v20 = vpop.f32.mrb[23].mxu0 }
 0x122   :  { %v843_v21 = vadd.f32 %v842_v20, %v841_v17  ;;  %v906_v22 = vpop.f32.mrb[23].mxu1 }
 0x123   :  { %v635_v23 = vadd.f32 %v904_v18, %v840_v15  ;;  %v907_v24 = vadd.f32 %v906_v22, %v905_v19 }
 0x125   :  { %v663_v25 = vmax.f32 %v659_v57, %v635_v23  ;;  %v638_v26 = vadd.f32 %v907_v24, %v843_v21 }
 0x126   :  { %v844_v27 = vpop.f32.mrb[24].mxu0 }
 0x127   :  { %v664_v28 = vmax.f32 %v660_v60, %v638_v26  ;;  %v908_v29 = vpop.f32.mrb[24].mxu1  ;;  %v845_v30 = vpop.f32.mrb[25].mxu0 }
 0x128   :  { %v846_v31 = vadd.f32 %v845_v30, %v844_v27  ;;  %v909_v32 = vpop.f32.mrb[25].mxu1  ;;  %v847_v33 = vpop.f32.mrb[26].mxu0 }
 0x129   :  { %v910_v34 = vadd.f32 %v909_v32, %v908_v29  ;;  %v911_v35 = vpop.f32.mrb[26].mxu1  ;;  %v848_v36 = vpop.f32.mrb[27].mxu0 }
 0x12a   :  { %v849_v37 = vadd.f32 %v848_v36, %v847_v33  ;;  %v912_v38 = vpop.f32.mrb[27].mxu1 }
 0x12b   :  { %v643_v39 = vadd.f32 %v910_v34, %v846_v31  ;;  %v913_v40 = vadd.f32 %v912_v38, %v911_v35 }
 0x12d   :  { %v665_v42 = vmax.f32 %v661_v9, %v643_v39  ;;  %v646_v43 = vadd.f32 %v913_v40, %v849_v37 }
 0x12e   :  { %v850_v44 = vpop.f32.mrb[28].mxu0 }
 0x12f   :  { %v676_v45 = vadd.f32 %v772_v41, %v665_v42  ;;  %v666_v46 = vmax.f32 %v662_v12, %v646_v43  ;;  %v914_v47 = vpop.f32.mrb[28].mxu1  ;;  %v851_v48 = vpop.f32.mrb[29].mxu0 }
 0x130   :  { %v852_v49 = vadd.f32 %v851_v48, %v850_v44  ;;  %v915_v50 = vpop.f32.mrb[29].mxu1  ;;  %v853_v51 = vpop.f32.mrb[30].mxu0 }
 0x131   :  { %v677_v52 = vadd.f32 %v772_v41, %v666_v46  ;;  %v916_v53 = vadd.f32 %v915_v50, %v914_v47  ;;  %v917_v54 = vpop.f32.mrb[30].mxu1  ;;  %v854_v55 = vpop.f32.mrb[31].mxu0  ;;  %v680_v58 = vmax.f32 %v676_v45, 0.0 }
 0x132   :  { %v855_v56 = vadd.f32 %v854_v55, %v853_v51  ;;  %v918_v57 = vpop.f32.mrb[31].mxu1 }
 0x133   :  { %v681_v59 = vmax.f32 %v677_v52, 0.0  ;;  %v651_v60 = vadd.f32 %v916_v53, %v852_v49  ;;  %v919_v61 = vadd.f32 %v918_v57, %v917_v54 }
 0x135   :  { %v784_v62 = vpack.c.bf16 %v681_v59, %v680_v58  ;;  %v667_v63 = vmax.f32 %v663_v25, %v651_v60  ;;  %v654_v0 = vadd.f32 %v919_v61, %v855_v56 }
 0x137   :  { %785 = vst [vmem:[%s1236_s3] sm:$0xff] %v784_v62   ;;  %v678_v1 = vadd.f32 %v772_v41, %v667_v63  ;;  %v668_v2 = vmax.f32 %v664_v28, %v654_v0 }
 0x139   :  { %v679_v3 = vadd.f32 %v772_v41, %v668_v2  ;;  %v682_v4 = vmax.f32 %v678_v1, 0.0 }
 0x13b   :  { %v683_v5 = vmax.f32 %v679_v3, 0.0 }
 0x13d   :  { %v789_v6 = vpack.c.bf16 %v683_v5, %v682_v4 }
 0x13f   :  { %791 = vst [vmem:[%s1236_s3 + $0x8] sm:$0xff] %v789_v6  }

// kernel: mnist_net_forward.5
= control target key start
LH: loop header
LB: loop body
LE: loop exit
PB: predicated region body
PF: predicated region fallthrough
CT: control target
= control target key end

     0   :  { %vm2123_vm0 = vmmov 0   ;;  %s2622_s1 = inlined_call_operand.vmem [shape: bf16[2048,128], index: 1, kind: input, shape index: {}]   ;;  %s2623_s0 = inlined_call_operand.vmem [shape: bf16[16,2048], index: 0, kind: input, shape index: {}]   ;;  %s2624_s3 = inlined_call_operand.vmem [shape: bf16[128,128], index: 3, kind: input, shape index: {}]   ;;  %s2625_s2 = inlined_call_operand.vmem [shape: f32[1,128], index: 2, kind: input, shape index: {}]   ;;  %s2626_s4 = inlined_call_operand.vmem [shape: f32[1,128], index: 4, kind: input, shape index: {}]   ;;  %s2627_s5 = inlined_call_operand.vmem [shape: f32[16,128], index: 5, kind: output, shape index: {}]  }
   0x1   :  { %v1978_v0 = vld [vmem:[%s2622_s1 + $0x40] sm:$0xff]   ;;  %v1982_v4 = vld [vmem:[%s2622_s1 + $0x48] sm:$0xff]   ;;  %v1986_v8 = vld [vmem:[%s2622_s1 + $0x50] sm:$0xff]  }
   0x2   :  { %v1979_v1 = vld [vmem:[%s2622_s1 + $0xc0] sm:$0xff]   ;;  %1771 = vmatprep.subr.bf16.mxu0 %v1978_v0  ;;  %v1983_v5 = vld [vmem:[%s2622_s1 + $0xc8] sm:$0xff]   ;;  %v1987_v9 = vld [vmem:[%s2622_s1 + $0xd0] sm:$0xff]  }
   0x3   :  { %v1980_v2 = vld [vmem:[%s2622_s1] sm:$0xff]   ;;  %1793 = vmatprep.subr.bf16.mxu1 %v1979_v1  ;;  %v1984_v6 = vld [vmem:[%s2622_s1 + $0x8] sm:$0xff]   ;;  %v1988_v10 = vld [vmem:[%s2622_s1 + $0x10] sm:$0xff]  }
   0x4   :  { %v1981_v3 = vld [vmem:[%s2622_s1 + $0x80] sm:$0xff]   ;;  %1772 = vmatpush3.bf16.msra.mxu0 %v1980_v2  ;;  %v1985_v7 = vld [vmem:[%s2622_s1 + $0x88] sm:$0xff]   ;;  %v1989_v11 = vld [vmem:[%s2622_s1 + $0x90] sm:$0xff]  }
   0x5   :  { %1794 = vmatpush3.bf16.msra.mxu1 %v1981_v3  ;;  %1773 = vmatprep.subr.bf16.mxu0 %v1982_v4  ;;  %v1990_v12 = vld [vmem:[%s2622_s1 + $0x58] sm:$0xff]   ;;  %v1994_v16 = vld [vmem:[%s2622_s1 + $0x60] sm:$0xff]   ;;  %v1998_v20 = vld [vmem:[%s2622_s1 + $0x68] sm:$0xff]  }
   0x6   :  { %1795 = vmatprep.subr.bf16.mxu1 %v1983_v5  ;;  %v1991_v13 = vld [vmem:[%s2622_s1 + $0xd8] sm:$0xff]   ;;  %v1995_v17 = vld [vmem:[%s2622_s1 + $0xe0] sm:$0xff]   ;;  %v1999_v21 = vld [vmem:[%s2622_s1 + $0xe8] sm:$0xff]  }
   0x7   :  { %v1992_v14 = vld [vmem:[%s2622_s1 + $0x18] sm:$0xff]   ;;  %v1996_v18 = vld [vmem:[%s2622_s1 + $0x20] sm:$0xff]   ;;  %v2000_v22 = vld [vmem:[%s2622_s1 + $0x28] sm:$0xff]  }
   0x8   :  { %1774 = vmatpush3.bf16.msra.mxu0 %v1984_v6  ;;  %v1993_v15 = vld [vmem:[%s2622_s1 + $0x98] sm:$0xff]   ;;  %v1997_v19 = vld [vmem:[%s2622_s1 + $0xa0] sm:$0xff]   ;;  %v2001_v23 = vld [vmem:[%s2622_s1 + $0xa8] sm:$0xff]  }
   0x9   :  { %1796 = vmatpush3.bf16.msra.mxu1 %v1985_v7  ;;  %1775 = vmatprep.subr.bf16.mxu0 %v1986_v8  ;;  %v2002_v24 = vld [vmem:[%s2622_s1 + $0x70] sm:$0xff]   ;;  %v2006_v28 = vld [vmem:[%s2622_s1 + $0x78] sm:$0xff]   ;;  %v21_v32 = vld [vmem:[%s2623_s0] sm:$0xff] }
   0xa   :  { %1797 = vmatprep.subr.bf16.mxu1 %v1987_v9  ;;  %v2003_v25 = vld [vmem:[%s2622_s1 + $0xf0] sm:$0xff]   ;;  %v2007_v29 = vld [vmem:[%s2622_s1 + $0xf8] sm:$0xff]   ;;  %v29_v33 = vld [vmem:[%s2623_s0 + $0x40] sm:$0xff] }
   0xb   :  { %v2004_v26 = vld [vmem:[%s2622_s1 + $0x30] sm:$0xff]   ;;  %v2008_v30 = vld [vmem:[%s2622_s1 + $0x38] sm:$0xff]   ;;  %v22_v34 = vld [vmem:[%s2623_s0 + $0x8] sm:$0xff]  ;;  %v1618_v35 = vcombine.low %v21_v32, %v29_v33  ;;  %v1619_v36 = vcombine.high %v21_v32, %v29_v33 }
   0xc   :  { %1776 = vmatpush3.bf16.msra.mxu0 %v1988_v10  ;;  %v2005_v27 = vld [vmem:[%s2622_s1 + $0xb0] sm:$0xff]   ;;  %v2009_v31 = vld [vmem:[%s2622_s1 + $0xb8] sm:$0xff]   ;;  %v30_v37 = vld [vmem:[%s2623_s0 + $0x48] sm:$0xff] }
   0xd   :  { %1798 = vmatpush3.bf16.msra.mxu1 %v1989_v11  ;;  %1777 = vmatprep.subr.bf16.mxu0 %v1990_v12  ;;  %v1620_v38 = vcombine.low %v22_v34, %v30_v37  ;;  %v1621_v39 = vcombine.high %v22_v34, %v30_v37  ;;  %v2010_v40 = vld [vmem:[%s2622_s1 + $0x140] sm:$0xff]   ;;  %v2014_v44 = vld [vmem:[%s2622_s1 + $0x148] sm:$0xff]   ;;  %v2018_v48 = vld [vmem:[%s2622_s1 + $0x150] sm:$0xff]  }
   0xe   :  { %1799 = vmatprep.subr.bf16.mxu1 %v1991_v13  ;;  %1180 = vmatprep.mubr.bf16.mxu0 %v1619_v36  ;;  %v2011_v41 = vld [vmem:[%s2622_s1 + $0x1c0] sm:$0xff]   ;;  %v2015_v45 = vld [vmem:[%s2622_s1 + $0x1c8] sm:$0xff]   ;;  %v2019_v49 = vld [vmem:[%s2622_s1 + $0x1d0] sm:$0xff]  }
   0xf   :  { %1221 = vmatprep.mubr.bf16.mxu1 %v1621_v39  ;;  %v2012_v42 = vld [vmem:[%s2622_s1 + $0x100] sm:$0xff]   ;;  %v2016_v46 = vld [vmem:[%s2622_s1 + $0x108] sm:$0xff]   ;;  %v2020_v50 = vld [vmem:[%s2622_s1 + $0x110] sm:$0xff]  }
  0x10   :  { %1778 = vmatpush3.bf16.msra.mxu0 %v1992_v14  ;;  %v2013_v43 = vld [vmem:[%s2622_s1 + $0x180] sm:$0xff]   ;;  %v2017_v47 = vld [vmem:[%s2622_s1 + $0x188] sm:$0xff]   ;;  %v2021_v51 = vld [vmem:[%s2622_s1 + $0x190] sm:$0xff]  }
  0x11   :  { %1800 = vmatpush3.bf16.msra.mxu1 %v1993_v15  ;;  %1779 = vmatprep.subr.bf16.mxu0 %v1994_v16  ;;  %v2022_v52 = vld [vmem:[%s2622_s1 + $0x158] sm:$0xff]   ;;  %v2026_v56 = vld [vmem:[%s2622_s1 + $0x160] sm:$0xff]   ;;  %v2030_v60 = vld [vmem:[%s2622_s1 + $0x168] sm:$0xff]  }
  0x12   :  { %1801 = vmatprep.subr.bf16.mxu1 %v1995_v17  ;;  %v2023_v53 = vld [vmem:[%s2622_s1 + $0x1d8] sm:$0xff]   ;;  %v2027_v57 = vld [vmem:[%s2622_s1 + $0x1e0] sm:$0xff]   ;;  %v2031_v61 = vld [vmem:[%s2622_s1 + $0x1e8] sm:$0xff]  }
  0x13   :  { %v2024_v54 = vld [vmem:[%s2622_s1 + $0x118] sm:$0xff]   ;;  %v2028_v58 = vld [vmem:[%s2622_s1 + $0x120] sm:$0xff]   ;;  %v2032_v62 = vld [vmem:[%s2622_s1 + $0x128] sm:$0xff]  }
  0x14   :  { %1780 = vmatpush3.bf16.msra.mxu0 %v1996_v18  ;;  %v2025_v55 = vld [vmem:[%s2622_s1 + $0x198] sm:$0xff]   ;;  %v2029_v59 = vld [vmem:[%s2622_s1 + $0x1a0] sm:$0xff]   ;;  %v2033_v63 = vld [vmem:[%s2622_s1 + $0x1a8] sm:$0xff]  }
  0x15   :  { %1802 = vmatpush3.bf16.msra.mxu1 %v1997_v19  ;;  %1781 = vmatprep.subr.bf16.mxu0 %v1998_v20  ;;  %v2034_v0 = vld [vmem:[%s2622_s1 + $0x170] sm:$0xff]   ;;  %v2038_v4 = vld [vmem:[%s2622_s1 + $0x178] sm:$0xff]   ;;  %v2042_v16 = vld [vmem:[%s2622_s1 + $0x240] sm:$0xff]  }
  0x16   :  { %1803 = vmatprep.subr.bf16.mxu1 %v1999_v21  ;;  %v2035_v1 = vld [vmem:[%s2622_s1 + $0x1f0] sm:$0xff]   ;;  %v2039_v5 = vld [vmem:[%s2622_s1 + $0x1f8] sm:$0xff]   ;;  %v2043_v17 = vld [vmem:[%s2622_s1 + $0x2c0] sm:$0xff]  }
  0x17   :  { %v2036_v2 = vld [vmem:[%s2622_s1 + $0x130] sm:$0xff]   ;;  %v2040_v6 = vld [vmem:[%s2622_s1 + $0x138] sm:$0xff]   ;;  %v2044_v18 = vld [vmem:[%s2622_s1 + $0x200] sm:$0xff]  }
  0x18   :  { %1782 = vmatpush3.bf16.msra.mxu0 %v2000_v22  ;;  %v2037_v3 = vld [vmem:[%s2622_s1 + $0x1b0] sm:$0xff]   ;;  %v2041_v7 = vld [vmem:[%s2622_s1 + $0x1b8] sm:$0xff]   ;;  %v2045_v19 = vld [vmem:[%s2622_s1 + $0x280] sm:$0xff]  }
  0x19   :  { %1804 = vmatpush3.bf16.msra.mxu1 %v2001_v23  ;;  %1783 = vmatprep.subr.bf16.mxu0 %v2002_v24  ;;  %v23_v8 = vld [vmem:[%s2623_s0 + $0x10] sm:$0xff]  ;;  %v24_v12 = vld [vmem:[%s2623_s0 + $0x18] sm:$0xff]  ;;  %v2046_v20 = vld [vmem:[%s2622_s1 + $0x248] sm:$0xff]  }
  0x1a   :  { %1805 = vmatprep.subr.bf16.mxu1 %v2003_v25  ;;  %v31_v9 = vld [vmem:[%s2623_s0 + $0x50] sm:$0xff]  ;;  %v32_v13 = vld [vmem:[%s2623_s0 + $0x58] sm:$0xff]  ;;  %v2047_v21 = vld [vmem:[%s2622_s1 + $0x2c8] sm:$0xff]  }
  0x1b   :  { %v1622_v10 = vcombine.low %v23_v8, %v31_v9  ;;  %v1623_v11 = vcombine.high %v23_v8, %v31_v9  ;;  %v1624_v14 = vcombine.low %v24_v12, %v32_v13  ;;  %v1625_v15 = vcombine.high %v24_v12, %v32_v13  ;;  %v2048_v22 = vld [vmem:[%s2622_s1 + $0x208] sm:$0xff]   ;;  %v2050_v24 = vld [vmem:[%s2622_s1 + $0x250] sm:$0xff]   ;;  %v2058_v32 = vld [vmem:[%s2622_s1 + $0x260] sm:$0xff]  }
  0x1c   :  { %1784 = vmatpush3.bf16.msra.mxu0 %v2004_v26  ;;  %v2049_v23 = vld [vmem:[%s2622_s1 + $0x288] sm:$0xff]   ;;  %v2051_v25 = vld [vmem:[%s2622_s1 + $0x2d0] sm:$0xff]   ;;  %v2059_v33 = vld [vmem:[%s2622_s1 + $0x2e0] sm:$0xff]  }
  0x1d   :  { %1806 = vmatpush3.bf16.msra.mxu1 %v2005_v27  ;;  %1785 = vmatprep.subr.bf16.mxu0 %v2006_v28  ;;  %v2052_v26 = vld [vmem:[%s2622_s1 + $0x210] sm:$0xff]   ;;  %v2054_v28 = vld [vmem:[%s2622_s1 + $0x258] sm:$0xff]   ;;  %v2060_v34 = vld [vmem:[%s2622_s1 + $0x220] sm:$0xff]  }
  0x1e   :  { %1807 = vmatprep.subr.bf16.mxu1 %v2007_v29  ;;  %v2053_v27 = vld [vmem:[%s2622_s1 + $0x290] sm:$0xff]   ;;  %v2055_v29 = vld [vmem:[%s2622_s1 + $0x2d8] sm:$0xff]   ;;  %v2062_v36 = vld [vmem:[%s2622_s1 + $0x268] sm:$0xff]  }
  0x1f   :  { %v2063_v37 = vld [vmem:[%s2622_s1 + $0x2e8] sm:$0xff]   ;;  %v2090_v8 = vld [vmem:[%s2622_s1 + $0x360] sm:$0xff]  }
  0x20   :  { %1786 = vmatpush3.bf16.msra.mxu0 %v2008_v30  ;;  %v2056_v30 = vld [vmem:[%s2622_s1 + $0x218] sm:$0xff]   ;;  %v2065_v39 = vld [vmem:[%s2622_s1 + $0x2a8] sm:$0xff]   ;;  %v2091_v9 = vld [vmem:[%s2622_s1 + $0x3e0] sm:$0xff]  }
  0x21   :  { %1808 = vmatpush3.bf16.msra.mxu1 %v2009_v31  ;;  %1815 = vmatprep.subr.bf16.mxu0 %v2010_v40  ;;  %v2057_v31 = vld [vmem:[%s2622_s1 + $0x298] sm:$0xff]   ;;  %v2066_v40 = vld [vmem:[%s2622_s1 + $0x270] sm:$0xff]   ;;  %v2094_v12 = vld [vmem:[%s2622_s1 + $0x368] sm:$0xff]  }
  0x22   :  { %1837 = vmatprep.subr.bf16.mxu1 %v2011_v41  ;;  %v2067_v41 = vld [vmem:[%s2622_s1 + $0x2f0] sm:$0xff]   ;;  %v2095_v13 = vld [vmem:[%s2622_s1 + $0x3e8] sm:$0xff]  }
  0x23   :  { %1181 = vmatmul.mubr.bf16.vlgmr.msra.gmra.mrb[0].mxu0 %v1618_v35  ;;  %v2061_v35 = vld [vmem:[%s2622_s1 + $0x2a0] sm:$0xff]  }
  0x24   :  { %1222 = vmatmul.mubr.bf16.vlgmr.msra.gmra.mrb[0].mxu1 %v1620_v38  ;;  %1816 = vmatpush3.bf16.msra.mxu0 %v2012_v42  ;;  %v2064_v38 = vld [vmem:[%s2622_s1 + $0x228] sm:$0xff]   ;;  %v2068_v42 = vld [vmem:[%s2622_s1 + $0x230] sm:$0xff]  }
  0x25   :  { %1838 = vmatpush3.bf16.msra.mxu1 %v2013_v43  ;;  %1817 = vmatprep.subr.bf16.mxu0 %v2014_v44  ;;  %v2069_v43 = vld [vmem:[%s2622_s1 + $0x2b0] sm:$0xff]   ;;  %v2070_v44 = vld [vmem:[%s2622_s1 + $0x278] sm:$0xff]  }
  0x26   :  { %1839 = vmatprep.subr.bf16.mxu1 %v2015_v45  ;;  %1262 = vmatprep.mubr.bf16.mxu0 %v1623_v11  ;;  %v2071_v45 = vld [vmem:[%s2622_s1 + $0x2f8] sm:$0xff]   ;;  %v2093_v11 = vld [vmem:[%s2622_s1 + $0x3a0] sm:$0xff]  }
  0x27   :  { %1303 = vmatprep.mubr.bf16.mxu1 %v1625_v15  ;;  %v2097_v15 = vld [vmem:[%s2622_s1 + $0x3a8] sm:$0xff]  }
  0x28   :  { %1818 = vmatpush3.bf16.msra.mxu0 %v2016_v46  ;;  %v2072_v46 = vld [vmem:[%s2622_s1 + $0x238] sm:$0xff]  }
  0x29   :  { %1840 = vmatpush3.bf16.msra.mxu1 %v2017_v47  ;;  %1819 = vmatprep.subr.bf16.mxu0 %v2018_v48  ;;  %v2073_v47 = vld [vmem:[%s2622_s1 + $0x2b8] sm:$0xff]   ;;  %v25_v48 = vld [vmem:[%s2623_s0 + $0x20] sm:$0xff] }
  0x2a   :  { %1841 = vmatprep.subr.bf16.mxu1 %v2019_v49  ;;  %v33_v49 = vld [vmem:[%s2623_s0 + $0x60] sm:$0xff] }
  0x2c   :  { %1820 = vmatpush3.bf16.msra.mxu0 %v2020_v50  ;;  %v26_v50 = vld [vmem:[%s2623_s0 + $0x28] sm:$0xff] }
  0x2d   :  { %1842 = vmatpush3.bf16.msra.mxu1 %v2021_v51  ;;  %1821 = vmatprep.subr.bf16.mxu0 %v2022_v52  ;;  %v34_v51 = vld [vmem:[%s2623_s0 + $0x68] sm:$0xff]  ;;  %v1626_v52 = vcombine.low %v25_v48, %v33_v49 }
  0x2e   :  { %1843 = vmatprep.subr.bf16.mxu1 %v2023_v53  ;;  %v1627_v53 = vcombine.high %v25_v48, %v33_v49 }
  0x30   :  { %1822 = vmatpush3.bf16.msra.mxu0 %v2024_v54  ;;  %v1628_v54 = vcombine.low %v26_v50, %v34_v51 }
  0x31   :  { %1844 = vmatpush3.bf16.msra.mxu1 %v2025_v55  ;;  %1823 = vmatprep.subr.bf16.mxu0 %v2026_v56  ;;  %v1629_v55 = vcombine.high %v26_v50, %v34_v51  ;;  %v2074_v56 = vld [vmem:[%s2622_s1 + $0x340] sm:$0xff]  }
  0x32   :  { %1845 = vmatprep.subr.bf16.mxu1 %v2027_v57  ;;  %v2075_v57 = vld [vmem:[%s2622_s1 + $0x3c0] sm:$0xff]  }
  0x34   :  { %1824 = vmatpush3.bf16.msra.mxu0 %v2028_v58  ;;  %v2076_v58 = vld [vmem:[%s2622_s1 + $0x300] sm:$0xff]  }
  0x35   :  { %1846 = vmatpush3.bf16.msra.mxu1 %v2029_v59  ;;  %1825 = vmatprep.subr.bf16.mxu0 %v2030_v60  ;;  %v2077_v59 = vld [vmem:[%s2622_s1 + $0x380] sm:$0xff]   ;;  %v2078_v60 = vld [vmem:[%s2622_s1 + $0x348] sm:$0xff]  }
  0x36   :  { %1847 = vmatprep.subr.bf16.mxu1 %v2031_v61  ;;  %v2079_v61 = vld [vmem:[%s2622_s1 + $0x3c8] sm:$0xff]  }
  0x38   :  { %1826 = vmatpush3.bf16.msra.mxu0 %v2032_v62  ;;  %v2080_v62 = vld [vmem:[%s2622_s1 + $0x308] sm:$0xff]  }
  0x39   :  { %1848 = vmatpush3.bf16.msra.mxu1 %v2033_v63  ;;  %1827 = vmatprep.subr.bf16.mxu0 %v2034_v0  ;;  %v2081_v63 = vld [vmem:[%s2622_s1 + $0x388] sm:$0xff]   ;;  %v2082_v0 = vld [vmem:[%s2622_s1 + $0x350] sm:$0xff]  }
  0x3a   :  { %1849 = vmatprep.subr.bf16.mxu1 %v2035_v1  ;;  %v2083_v1 = vld [vmem:[%s2622_s1 + $0x3d0] sm:$0xff]  }
  0x3c   :  { %1828 = vmatpush3.bf16.msra.mxu0 %v2036_v2  ;;  %v2084_v2 = vld [vmem:[%s2622_s1 + $0x310] sm:$0xff]  }
  0x3d   :  { %1850 = vmatpush3.bf16.msra.mxu1 %v2037_v3  ;;  %1829 = vmatprep.subr.bf16.mxu0 %v2038_v4  ;;  %v2085_v3 = vld [vmem:[%s2622_s1 + $0x390] sm:$0xff]   ;;  %v2086_v4 = vld [vmem:[%s2622_s1 + $0x358] sm:$0xff]  }
  0x3e   :  { %1851 = vmatprep.subr.bf16.mxu1 %v2039_v5  ;;  %v2087_v5 = vld [vmem:[%s2622_s1 + $0x3d8] sm:$0xff]  }
  0x40   :  { %1830 = vmatpush3.bf16.msra.mxu0 %v2040_v6  ;;  %v2088_v6 = vld [vmem:[%s2622_s1 + $0x318] sm:$0xff]  }
  0x41   :  { %1852 = vmatpush3.bf16.msra.mxu1 %v2041_v7  ;;  %1859 = vmatprep.subr.bf16.mxu0 %v2042_v16  ;;  %v2089_v7 = vld [vmem:[%s2622_s1 + $0x398] sm:$0xff]   ;;  %v2098_v16 = vld [vmem:[%s2622_s1 + $0x370] sm:$0xff]  }
  0x42   :  { %1881 = vmatprep.subr.bf16.mxu1 %v2043_v17  ;;  %v2099_v17 = vld [vmem:[%s2622_s1 + $0x3f0] sm:$0xff]  }
  0x43   :  { %1263 = vmatmul.mubr.bf16.vlgmr.msra.gmra.mrb[4].mxu0 %v1622_v10  ;;  %v2092_v10 = vld [vmem:[%s2622_s1 + $0x320] sm:$0xff]  }
  0x44   :  { %1304 = vmatmul.mubr.bf16.vlgmr.msra.gmra.mrb[4].mxu1 %v1624_v14  ;;  %1860 = vmatpush3.bf16.msra.mxu0 %v2044_v18  ;;  %v2096_v14 = vld [vmem:[%s2622_s1 + $0x328] sm:$0xff]   ;;  %v2100_v18 = vld [vmem:[%s2622_s1 + $0x330] sm:$0xff]  }
  0x45   :  { %1882 = vmatpush3.bf16.msra.mxu1 %v2045_v19  ;;  %1861 = vmatprep.subr.bf16.mxu0 %v2046_v20  ;;  %v2101_v19 = vld [vmem:[%s2622_s1 + $0x3b0] sm:$0xff]   ;;  %v2102_v20 = vld [vmem:[%s2622_s1 + $0x378] sm:$0xff]  }
  0x46   :  { %1883 = vmatprep.subr.bf16.mxu1 %v2047_v21  ;;  %1344 = vmatprep.mubr.bf16.mxu0 %v1627_v53  ;;  %v2103_v21 = vld [vmem:[%s2622_s1 + $0x3f8] sm:$0xff]  }
  0x47   :  { %1385 = vmatprep.mubr.bf16.mxu1 %v1629_v55 }
  0x48   :  { %1862 = vmatpush3.bf16.msra.mxu0 %v2048_v22  ;;  %v2104_v22 = vld [vmem:[%s2622_s1 + $0x338] sm:$0xff]  }
  0x49   :  { %1884 = vmatpush3.bf16.msra.mxu1 %v2049_v23  ;;  %1863 = vmatprep.subr.bf16.mxu0 %v2050_v24  ;;  %v2105_v23 = vld [vmem:[%s2622_s1 + $0x3b8] sm:$0xff]   ;;  %v27_v24 = vld [vmem:[%s2623_s0 + $0x30] sm:$0xff] }
  0x4a   :  { %1885 = vmatprep.subr.bf16.mxu1 %v2051_v25  ;;  %v35_v25 = vld [vmem:[%s2623_s0 + $0x70] sm:$0xff] }
  0x4c   :  { %1864 = vmatpush3.bf16.msra.mxu0 %v2052_v26  ;;  %v28_v26 = vld [vmem:[%s2623_s0 + $0x38] sm:$0xff] }
  0x4d   :  { %1886 = vmatpush3.bf16.msra.mxu1 %v2053_v27  ;;  %1865 = vmatprep.subr.bf16.mxu0 %v2054_v28  ;;  %v1630_v27 = vcombine.low %v27_v24, %v35_v25  ;;  %v1631_v28 = vcombine.high %v27_v24, %v35_v25 }
  0x4e   :  { %1887 = vmatprep.subr.bf16.mxu1 %v2055_v29  ;;  %v36_v29 = vld [vmem:[%s2623_s0 + $0x78] sm:$0xff] }
  0x50   :  { %1866 = vmatpush3.bf16.msra.mxu0 %v2056_v30  ;;  %v1632_v30 = vcombine.low %v28_v26, %v36_v29 }
  0x51   :  { %1888 = vmatpush3.bf16.msra.mxu1 %v2057_v31  ;;  %1867 = vmatprep.subr.bf16.mxu0 %v2058_v32  ;;  %v1633_v31 = vcombine.high %v28_v26, %v36_v29  ;;  %v2122_v32 = vmov 0.0  }
  0x52   :  { %1889 = vmatprep.subr.bf16.mxu1 %v2059_v33  ;;  %v2106_v33 = vld [vmem:[%s2624_s3] sm:$0xff]  }
  0x54   :  { %1868 = vmatpush3.bf16.msra.mxu0 %v2060_v34  ;;  %v2107_v34 = vld [vmem:[%s2624_s3 + $0x8] sm:$0xff]  }
  0x55   :  { %1890 = vmatpush3.bf16.msra.mxu1 %v2061_v35  ;;  %1869 = vmatprep.subr.bf16.mxu0 %v2062_v36  ;;  %v2108_v35 = vld [vmem:[%s2624_s3 + $0x10] sm:$0xff]   ;;  %v2109_v36 = vld [vmem:[%s2624_s3 + $0x18] sm:$0xff]  }
  0x56   :  { %1891 = vmatprep.subr.bf16.mxu1 %v2063_v37  ;;  %v2110_v37 = vld [vmem:[%s2624_s3 + $0x20] sm:$0xff]  }
  0x58   :  { %1870 = vmatpush3.bf16.msra.mxu0 %v2064_v38  ;;  %v2111_v38 = vld [vmem:[%s2624_s3 + $0x28] sm:$0xff]  }
  0x59   :  { %1892 = vmatpush3.bf16.msra.mxu1 %v2065_v39  ;;  %1871 = vmatprep.subr.bf16.mxu0 %v2066_v40  ;;  %v2112_v39 = vld [vmem:[%s2624_s3 + $0x30] sm:$0xff]   ;;  %v2113_v40 = vld [vmem:[%s2624_s3 + $0x38] sm:$0xff]  }
  0x5a   :  { %1893 = vmatprep.subr.bf16.mxu1 %v2067_v41 }
  0x5c   :  { %1872 = vmatpush3.bf16.msra.mxu0 %v2068_v42 }
  0x5d   :  { %1894 = vmatpush3.bf16.msra.mxu1 %v2069_v43  ;;  %1873 = vmatprep.subr.bf16.mxu0 %v2070_v44  ;;  %v1617_v43 = vld [vmem:[%s2625_s2] ss:$0 sm:$0xff] }
  0x5e   :  { %1895 = vmatprep.subr.bf16.mxu1 %v2071_v45 }
  0x60   :  { %1874 = vmatpush3.bf16.msra.mxu0 %v2072_v46 }
  0x61   :  { %1896 = vmatpush3.bf16.msra.mxu1 %v2073_v47  ;;  %1903 = vmatprep.subr.bf16.mxu0 %v2074_v56 }
  0x62   :  { %1925 = vmatprep.subr.bf16.mxu1 %v2075_v57 }
  0x63   :  { %1345 = vmatmul.mubr.bf16.vlgmr.msra.gmra.mrb[8].mxu0 %v1626_v52 }
  0x64   :  { %1386 = vmatmul.mubr.bf16.vlgmr.msra.gmra.mrb[8].mxu1 %v1628_v54  ;;  %1904 = vmatpush3.bf16.msra.mxu0 %v2076_v58 }
  0x65   :  { %1926 = vmatpush3.bf16.msra.mxu1 %v2077_v59  ;;  %1905 = vmatprep.subr.bf16.mxu0 %v2078_v60 }
  0x66   :  { %1927 = vmatprep.subr.bf16.mxu1 %v2079_v61  ;;  %1426 = vmatprep.mubr.bf16.mxu0 %v1631_v28 }
  0x67   :  { %1467 = vmatprep.mubr.bf16.mxu1 %v1633_v31 }
  0x68   :  { %1906 = vmatpush3.bf16.msra.mxu0 %v2080_v62 }
  0x69   :  { %1928 = vmatpush3.bf16.msra.mxu1 %v2081_v63  ;;  %1907 = vmatprep.subr.bf16.mxu0 %v2082_v0 }
  0x6a   :  { %1929 = vmatprep.subr.bf16.mxu1 %v2083_v1 }
  0x6c   :  { %1908 = vmatpush3.bf16.msra.mxu0 %v2084_v2 }
  0x6d   :  { %1930 = vmatpush3.bf16.msra.mxu1 %v2085_v3  ;;  %1909 = vmatprep.subr.bf16.mxu0 %v2086_v4 }
  0x6e   :  { %1931 = vmatprep.subr.bf16.mxu1 %v2087_v5 }
  0x70   :  { %1910 = vmatpush3.bf16.msra.mxu0 %v2088_v6 }
  0x71   :  { %1932 = vmatpush3.bf16.msra.mxu1 %v2089_v7  ;;  %1911 = vmatprep.subr.bf16.mxu0 %v2090_v8 }
  0x72   :  { %1933 = vmatprep.subr.bf16.mxu1 %v2091_v9 }
  0x74   :  { %1912 = vmatpush3.bf16.msra.mxu0 %v2092_v10 }
  0x75   :  { %1934 = vmatpush3.bf16.msra.mxu1 %v2093_v11  ;;  %1913 = vmatprep.subr.bf16.mxu0 %v2094_v12 }
  0x76   :  { %1935 = vmatprep.subr.bf16.mxu1 %v2095_v13 }
  0x78   :  { %1914 = vmatpush3.bf16.msra.mxu0 %v2096_v14 }
  0x79   :  { %1936 = vmatpush3.bf16.msra.mxu1 %v2097_v15  ;;  %1915 = vmatprep.subr.bf16.mxu0 %v2098_v16 }
  0x7a   :  { %1937 = vmatprep.subr.bf16.mxu1 %v2099_v17 }
  0x7c   :  { %1916 = vmatpush3.bf16.msra.mxu0 %v2100_v18 }
  0x7d   :  { %1938 = vmatpush3.bf16.msra.mxu1 %v2101_v19  ;;  %1917 = vmatprep.subr.bf16.mxu0 %v2102_v20 }
  0x7e   :  { %1939 = vmatprep.subr.bf16.mxu1 %v2103_v21 }
  0x80   :  { %1918 = vmatpush3.bf16.msra.mxu0 %v2104_v22 }
  0x81   :  { %1940 = vmatpush3.bf16.msra.mxu1 %v2105_v23  ;;  %1956 = vmatprep.subr.bf16.mxu0 %v2122_v32 }
  0x83   :  { %1427 = vmatmul.mubr.bf16.vlgmr.msra.gmra.mrb[12].mxu0 %v1630_v27 }
  0x84   :  { %1468 = vmatmul.mubr.bf16.vlgmr.msra.gmra.mrb[12].mxu1 %v1632_v30  ;;  %1957 = vmatpush3.bf16.msra.mxu0 %v2106_v33 }
  0x85   :  { %1958 = vmatprep.subr.bf16.mxu0 %v2122_v32  ;;  %1972 = vmatprep.mubr.msk.bf16.mxu0 %vm2123_vm0, %v2122_v32 }
  0x88   :  { %1959 = vmatpush3.bf16.msra.mxu0 %v2107_v34 }
  0x89   :  { %1960 = vmatprep.subr.bf16.mxu0 %v2122_v32 }
  0x8c   :  { %1961 = vmatpush3.bf16.msra.mxu0 %v2108_v35 }
  0x8d   :  { %1962 = vmatprep.subr.bf16.mxu0 %v2122_v32 }
  0x90   :  { %1963 = vmatpush3.bf16.msra.mxu0 %v2109_v36 }
  0x91   :  { %1964 = vmatprep.subr.bf16.mxu0 %v2122_v32 }
  0x94   :  { %1965 = vmatpush3.bf16.msra.mxu0 %v2110_v37 }
  0x95   :  { %1966 = vmatprep.subr.bf16.mxu0 %v2122_v32 }
  0x98   :  { %1967 = vmatpush3.bf16.msra.mxu0 %v2111_v38 }
  0x99   :  { %1968 = vmatprep.subr.bf16.mxu0 %v2122_v32 }
  0x9c   :  { %1969 = vmatpush3.bf16.msra.mxu0 %v2112_v39 }
  0x9d   :  { %1970 = vmatprep.subr.bf16.mxu0 %v2122_v32 }
  0xa0   :  { %1971 = vmatpush3.bf16.msra.mxu0 %v2113_v40 }
  0xf6   :  { %v1787_v41 = vpop.f32.mrb[0].mxu0 }
  0xf7   :  { %v1809_v42 = vpop.f32.mrb[0].mxu1  ;;  %v1788_v44 = vpop.f32.mrb[1].mxu0 }
  0xf8   :  { %v1789_v45 = vadd.f32 %v1788_v44, %v1787_v41  ;;  %v1810_v46 = vpop.f32.mrb[1].mxu1  ;;  %v1790_v47 = vpop.f32.mrb[2].mxu0 }
  0xf9   :  { %v1811_v48 = vadd.f32 %v1810_v46, %v1809_v42  ;;  %v1812_v49 = vpop.f32.mrb[2].mxu1  ;;  %v1791_v50 = vpop.f32.mrb[3].mxu0 }
  0xfa   :  { %v1183_v51 = vadd.f32 %v1789_v45, %v1617_v43  ;;  %v1792_v52 = vadd.f32 %v1791_v50, %v1790_v47  ;;  %v1813_v53 = vpop.f32.mrb[3].mxu1  ;;  %v1762_v45 = vld [vmem:[%s2626_s4] ss:$0 sm:$0xff] }
  0xfb   :  { %v1814_v54 = vadd.f32 %v1813_v53, %v1812_v49 }
  0xfc   :  { %v1224_v55 = vadd.f32 %v1811_v48, %v1183_v51  ;;  %v1186_v56 = vadd.f32 %v1792_v52, %v1617_v43 }
  0xfe   :  { %v1227_v57 = vadd.f32 %v1814_v54, %v1186_v56 }
 0x116   :  { %v1831_v58 = vpop.f32.mrb[4].mxu0 }
 0x117   :  { %v1853_v59 = vpop.f32.mrb[4].mxu1  ;;  %v1832_v60 = vpop.f32.mrb[5].mxu0 }
 0x118   :  { %v1833_v61 = vadd.f32 %v1832_v60, %v1831_v58  ;;  %v1854_v62 = vpop.f32.mrb[5].mxu1  ;;  %v1834_v63 = vpop.f32.mrb[6].mxu0 }
 0x119   :  { %v1855_v0 = vadd.f32 %v1854_v62, %v1853_v59  ;;  %v1856_v1 = vpop.f32.mrb[6].mxu1  ;;  %v1835_v2 = vpop.f32.mrb[7].mxu0 }
 0x11a   :  { %v1265_v3 = vadd.f32 %v1833_v61, %v1224_v55  ;;  %v1836_v4 = vadd.f32 %v1835_v2, %v1834_v63  ;;  %v1857_v5 = vpop.f32.mrb[7].mxu1 }
 0x11b   :  { %v1858_v6 = vadd.f32 %v1857_v5, %v1856_v1 }
 0x11c   :  { %v1306_v7 = vadd.f32 %v1855_v0, %v1265_v3  ;;  %v1268_v8 = vadd.f32 %v1836_v4, %v1227_v57 }
 0x11e   :  { %v1309_v9 = vadd.f32 %v1858_v6, %v1268_v8 }
 0x136   :  { %v1875_v10 = vpop.f32.mrb[8].mxu0 }
 0x137   :  { %v1897_v11 = vpop.f32.mrb[8].mxu1  ;;  %v1876_v12 = vpop.f32.mrb[9].mxu0 }
 0x138   :  { %v1898_v13 = vpop.f32.mrb[9].mxu1  ;;  %v1877_v14 = vadd.f32 %v1876_v12, %v1875_v10  ;;  %v1878_v16 = vpop.f32.mrb[10].mxu0 }
 0x139   :  { %v1899_v15 = vadd.f32 %v1898_v13, %v1897_v11  ;;  %v1900_v17 = vpop.f32.mrb[10].mxu1  ;;  %v1879_v18 = vpop.f32.mrb[11].mxu0 }
 0x13a   :  { %v1901_v19 = vpop.f32.mrb[11].mxu1  ;;  %v1347_v20 = vadd.f32 %v1877_v14, %v1306_v7  ;;  %v1880_v21 = vadd.f32 %v1879_v18, %v1878_v16 }
 0x13b   :  { %v1902_v22 = vadd.f32 %v1901_v19, %v1900_v17 }
 0x13c   :  { %v1388_v23 = vadd.f32 %v1899_v15, %v1347_v20  ;;  %v1350_v24 = vadd.f32 %v1880_v21, %v1309_v9 }
 0x13e   :  { %v1391_v25 = vadd.f32 %v1902_v22, %v1350_v24 }
 0x156   :  { %v1919_v26 = vpop.f32.mrb[12].mxu0 }
 0x157   :  { %v1941_v27 = vpop.f32.mrb[12].mxu1  ;;  %v1920_v28 = vpop.f32.mrb[13].mxu0 }
 0x158   :  { %v1921_v29 = vadd.f32 %v1920_v28, %v1919_v26  ;;  %v1942_v30 = vpop.f32.mrb[13].mxu1  ;;  %v1922_v31 = vpop.f32.mrb[14].mxu0 }
 0x159   :  { %v1943_v32 = vadd.f32 %v1942_v30, %v1941_v27  ;;  %v1944_v33 = vpop.f32.mrb[14].mxu1  ;;  %v1923_v34 = vpop.f32.mrb[15].mxu0 }
 0x15a   :  { %v1429_v35 = vadd.f32 %v1921_v29, %v1388_v23  ;;  %v1924_v36 = vadd.f32 %v1923_v34, %v1922_v31  ;;  %v1945_v37 = vpop.f32.mrb[15].mxu1 }
 0x15b   :  { %v1946_v38 = vadd.f32 %v1945_v37, %v1944_v33 }
 0x15c   :  { %v1470_v39 = vadd.f32 %v1943_v32, %v1429_v35  ;;  %v1432_v40 = vadd.f32 %v1924_v36, %v1391_v25 }
 0x15e   :  { %v1473_v41 = vadd.f32 %v1946_v38, %v1432_v40  ;;  %v1476_v42 = vmax.f32 %v1470_v39, 0.0 }
 0x160   :  { %v1477_v43 = vmax.f32 %v1473_v41, 0.0 }
 0x162   :  { %v1478_v44 = vpack.c.bf16 %v1477_v43, %v1476_v42 }
 0x164   :  { %1973 = vmatmul.mubr.bf16.vlgmr.msra.gmra.mrb[16].mxu0 %v1478_v44 }
 0x237   :  { %v1584_v46 = vpop.f32.mrb[16].mxu0 }
 0x238   :  { %v1585_v47 = vadd.f32 %v1762_v45, %v1584_v46  ;;  %v1974_v48 = vpop.f32.mrb[17].mxu0 }
 0x239   :  { %v1587_v49 = vpop.f32.mrb[18].mxu0 }
 0x23a   :  { %1591 = vmax.xlane.f32.xlu0 %v1585_v47  ;;  %v1975_v50 = vpop.f32.mrb[19].mxu0  ;;  %v1588_v51 = vadd.f32 %v1762_v45, %v1587_v49 }
 0x23e   :  { %1593 = vmax.xlane.f32.xlu0 %v1588_v51 }
 0x2c7   :  { %v1592_v52 = vpop.xlane.xlu0 %1591 }
 0x2c8   :  { %v1595_v53 = vsub.f32 %v1585_v47, %v1592_v52 }
 0x2ca   :  { %v1597_v54 = vmul.f32 1.442695, %v1595_v53 }
 0x2cb   :  { %v1594_v55 = vpop.xlane.xlu0 %1593 }
 0x2cc   :  { %v1596_v56 = vsub.f32 %v1588_v51, %v1594_v55  ;;  %2114 = vpow2.f32 %v1597_v54 }
 0x2ce   :  { %v1599_v57 = vmul.f32 1.442695, %v1596_v56 }
 0x2d0   :  { %2116 = vpow2.f32 %v1599_v57 }
 0x2d6   :  { %v2115_v58 = vpop.eup %2114 }
 0x2d7   :  { %1601 = vadd.xlane.f32.xlu1 %v2115_v58 }
 0x2da   :  { %v2117_v59 = vpop.eup %2116 }
 0x2db   :  { %1603 = vadd.xlane.f32.xlu1 %v2117_v59 }
 0x364   :  { %v1602_v60 = vpop.xlane.xlu1 %1601 }
 0x365   :  { %2118 = vlog2.f32 %v1602_v60 }
 0x368   :  { %v1604_v61 = vpop.xlane.xlu1 %1603 }
 0x369   :  { %2120 = vlog2.f32 %v1604_v61 }
 0x36f   :  { %v2119_v62 = vpop.eup %2118 }
 0x370   :  { %v1606_v63 = vmul.f32 0.6931472, %v2119_v62 }
 0x372   :  { %v1609_v0 = vsub.f32 %v1595_v53, %v1606_v63 }
 0x373   :  { %v2121_v1 = vpop.eup %2120 }
 0x374   :  { %1611 = vst [vmem:[%s2627_s5] sm:$0xff] %v1609_v0  ;;  %v1608_v2 = vmul.f32 0.6931472, %v2121_v1 }
 0x376   :  { %v1610_v3 = vsub.f32 %v1596_v56, %v1608_v2 }
 0x378   :  { %1612 = vst [vmem:[%s2627_s5 + $0x8] sm:$0xff] %v1610_v3 }

</bundles_post_ra>
